<compile_context>
chip_gen: v7x
topology: tpu7x:2x2x1
jax: 0.10.0
libtpu: 0.0.40
codegen_flags: <defaults>
</compile_context>

<pallas_src>
import jax
import jax.numpy as jnp
import numpy as np
from jax import lax
from jax.experimental import pallas as pl
from jax.experimental.pallas import tpu as pltpu

_NEG_BIG = -1e30        # finite "-inf" for padded vocab entries (no inf-inf NaNs)


# ------------------------------ small helpers ------------------------------ #
def _round_up(x, m):
    return ((x + m - 1) // m) * m


def _vmem_limit_bytes():
    """Generation-aware scoped-VMEM limit (~3/4 of physical, capped at 100 MiB)."""
    cap = 64 * 1024 * 1024                     # conservative default (v7x physical)
    try:
        cap = int(getattr(pltpu.get_tpu_info(), "vmem_capacity_bytes", cap))
    except Exception:
        pass
    return min((cap * 3) // 4, 100 * 1024 * 1024)


def _proj_row_tile(R, Ep, H3, budget):
    Rt = min(_round_up(R, 8), 512)

    def cost(rt):
        return 2 * rt * Ep * 2 + 2 * rt * H3 * 2 + 2 * H3 * Ep * 2 + 2 * H3 * 4

    while Rt > 8 and cost(Rt) > budget:
        Rt = _round_up(max(8, Rt // 2), 8)
    return Rt


def _head_tiles(R, Hp, Ep, Vp, budget):
    def cost(rt, vt):
        return (2 * rt * Hp * 2          # hs block (bf16, double buffered)
                + 2 * rt * vt * 4        # output block (f32)
                + 2 * vt * Ep * 2        # embedding slab (bf16)
                + 2 * Ep * Hp * 2        # prehead weight
                + rt * Ep * 2            # pre scratch (bf16)
                + 2 * vt * 4 + 2 * Ep * 4 + 2 * rt * 8)

    Vt = min(Vp, 1024)                   # multiple of 128 by construction
    Rt = min(_round_up(R, 8), 512)
    while Rt > 8 and cost(Rt, Vt) > budget:
        Rt = _round_up(max(8, Rt // 2), 8)
    while Vt > 128 and cost(Rt, Vt) > budget:
        Vt -= 128
    return Rt, Vt


def _gru_time_block(T, Bb, Hp, budget):
    Kt = min(T, 16)

    def cost(kt):
        return (2 * kt * Bb * 3 * Hp * 2 + 2 * kt * Bb * Hp * 2
                + 2 * 3 * Hp * Hp * 2 + 2 * Bb * Hp * 4 + 2 * Hp * 4
                + Bb * Hp * 4)

    while Kt > 1 and cost(Kt) > budget:
        Kt = max(1, Kt // 2)
    return Kt


def _pad_gate_rows(w, H, Hp):
    """Pad the 3-gate-stacked leading axis of a PyTorch GRU weight/bias 3H->3Hp."""
    if w.ndim == 1:
        return jnp.pad(w.reshape(3, H), ((0, 0), (0, Hp - H))).reshape(3 * Hp)
    return jnp.pad(w.reshape(3, H, -1),
                   ((0, 0), (0, Hp - H), (0, 0))).reshape(3 * Hp, w.shape[-1])


# ----------------------------- Pallas kernels ------------------------------ #
def _input_proj_kernel(x_ref, wi_ref, bi_ref, gi_ref):
    """gi = x @ W_ih^T + (b_ih with b_hh[r], b_hh[z] folded in); stored bf16."""
    acc = lax.dot_general(x_ref[...], wi_ref[...],
                          dimension_numbers=(((1,), (1,)), ((), ())),
                          preferred_element_type=jnp.float32)
    gi_ref[...] = (acc + bi_ref[...]).astype(gi_ref.dtype)


def _gru_kernel(gi_ref, h0_ref, whh_ref, bhn_ref, hs_ref, h_scr):
    """Kt GRU timesteps per grid iteration; h carried in f32 VMEM scratch.

    gi_ref : (Kt, Bb, 3Hp) bf16  precomputed input-side gate projections
    h0_ref : (Bb, Hp)      f32   initial hidden state (this batch block)
    whh_ref: (3Hp, Hp)     bf16  fused hidden-to-hidden weight (gates r, z, n)
    bhn_ref: (1, Hp)       f32   hidden bias of the n gate (gated by r)
    hs_ref : (Kt, Bb, Hp)  bf16  output hidden states
    h_scr  : (Bb, Hp)      f32   VMEM scratch carrying h across time blocks
    """
    Hp = h0_ref.shape[1]
    Kt = gi_ref.shape[0]

    @pl.when(pl.program_id(1) == 0)
    def _():
        h_scr[...] = h0_ref[...]

    whh = whh_ref[...]
    bhn = bhn_ref[...]

    def step(k, h):
        gi = gi_ref[k].astype(jnp.float32)                          # (Bb, 3Hp)
        gh = lax.dot_general(h.astype(whh.dtype), whh,
                             dimension_numbers=(((1,), (1,)), ((), ())),
                             preferred_element_type=jnp.float32)    # (Bb, 3Hp)
        r = jax.nn.sigmoid(gi[:, :Hp] + gh[:, :Hp])
        z = jax.nn.sigmoid(gi[:, Hp:2 * Hp] + gh[:, Hp:2 * Hp])
        n = jnp.tanh(gi[:, 2 * Hp:] + r * (gh[:, 2 * Hp:] + bhn))
        h_new = (1.0 - z) * n + z * h
        hs_ref[k] = h_new.astype(hs_ref.dtype)
        return h_new

    h_scr[...] = lax.fori_loop(0, Kt, step, h_scr[...], unroll=True)


def _head_kernel(h_ref, wp_ref, bp_ref, emb_ref, bh_ref, out_ref,
                 pre_scr, m_scr, s_scr):
    """prehead + tied head + two-pass (vocab-tiled) log_softmax.

    grid = (row_tiles, 2 passes, vocab_tiles)
      pass 0: accumulate running max / sum-exp over vocab tiles
      pass 1: recompute the logit tile and write  logits - lse
    `pre` is computed once per row tile and reused from VMEM scratch.
    """
    p = pl.program_id(1)
    j = pl.program_id(2)

    @pl.when(jnp.logical_and(p == 0, j == 0))
    def _():
        pre = lax.dot_general(h_ref[...], wp_ref[...],
                              dimension_numbers=(((1,), (1,)), ((), ())),
                              preferred_element_type=jnp.float32) + bp_ref[...]
        pre_scr[...] = pre.astype(pre_scr.dtype)
        m_scr[...] = jnp.full(m_scr.shape, _NEG_BIG, m_scr.dtype)
        s_scr[...] = jnp.zeros(s_scr.shape, s_scr.dtype)

    logits = lax.dot_general(pre_scr[...], emb_ref[...],
                             dimension_numbers=(((1,), (1,)), ((), ())),
                             preferred_element_type=jnp.float32) + bh_ref[...]

    @pl.when(p == 0)
    def _():
        m_old = m_scr[...]
        m_new = jnp.maximum(m_old, jnp.max(logits, axis=-1, keepdims=True))
        s_scr[...] = (s_scr[...] * jnp.exp(m_old - m_new)
                      + jnp.sum(jnp.exp(logits - m_new), axis=-1, keepdims=True))
        m_scr[...] = m_new

    @pl.when(p == 1)
    def _():
        lse = m_scr[...] + jnp.log(s_scr[...])
        out_ref[...] = logits - lse


# ------------------------------- Wrapper ----------------------------------- #
def decoder_forward(target, hidden, params):
    """target: (B, T) int32 token ids; hidden: (1, B, H) float32 -> (B, T, V)."""
    f32, bf16 = jnp.float32, jnp.bfloat16

    emb = params["embedding"].astype(f32)                 # (V, E)
    V, E = emb.shape
    B, T = target.shape
    H = hidden.shape[-1]

    # lane/sublane-aligned padded sizes
    Hp = _round_up(H, 128)
    Ep = _round_up(E, 128)
    H3 = 3 * Hp
    Bp = _round_up(B, 8)
    R = T * Bp                                            # time-major rows

    vlim = _vmem_limit_bytes()
    budget = (vlim * 3) // 5                              # headroom for compiler scratch

    # tile selection (VMEM- and shape-aware)
    Vp0 = _round_up(V, 128)
    Rt, Vt = _head_tiles(R, Hp, Ep, Vp0, budget)
    Vp = _round_up(Vp0, Vt)
    R3 = _round_up(R, Rt)
    Rt1 = _proj_row_tile(R, Ep, H3, budget)
    R1 = _round_up(R, Rt1)

    Bblocks = 2 if (Bp % 16 == 0) else 1                  # v7x 2nd TC when possible
    Bb = Bp // Bblocks
    Kt = _gru_time_block(T, Bb, Hp, budget)
    Tp = _round_up(T, Kt)

    # ---- pad + cast parameters (constant folded under jit) ---- #
    emb_p = jnp.pad(emb, ((0, Vp - V), (0, Ep - E))).astype(bf16)          # (Vp, Ep)

    w_ih = params["gru_w_ih"].astype(f32)                 # (3H, E)
    w_hh = params["gru_w_hh"].astype(f32)                 # (3H, H)
    b_ih = params["gru_b_ih"].astype(f32)                 # (3H,)
    b_hh = params["gru_b_hh"].astype(f32)                 # (3H,)

    w_ih_p = jnp.pad(_pad_gate_rows(w_ih, H, Hp), ((0, 0), (0, Ep - E))).astype(bf16)
    w_hh_p = jnp.pad(_pad_gate_rows(w_hh, H, Hp), ((0, 0), (0, Hp - H))).astype(bf16)

    # fold b_hh[r], b_hh[z] into the input-projection bias; b_hh[n] stays separate
    bi = jnp.concatenate([b_ih[:2 * H] + b_hh[:2 * H], b_ih[2 * H:]])      # (3H,)
    bi_p = _pad_gate_rows(bi, H, Hp)[None]                                 # (1, 3Hp)
    bhn_p = jnp.pad(b_hh[2 * H:], (0, Hp - H))[None]                       # (1, Hp)

    wp_p = jnp.pad(params["prehead_w"].astype(f32),
                   ((0, Ep - E), (0, Hp - H))).astype(bf16)                # (Ep, Hp)
    bp_p = jnp.pad(params["prehead_b"].astype(f32), (0, Ep - E))[None]     # (1, Ep)
    bh_p = jnp.pad(params["head_b"].astype(f32), (0, Vp - V),
                   constant_values=_NEG_BIG)[None]                         # (1, Vp)

    h0 = jnp.pad(hidden.reshape(B, H).astype(f32),
                 ((0, Bp - B), (0, Hp - H)))                               # (Bp, Hp)

    # ---- embedding gather + layout glue (XLA) ---- #
    gathered = jnp.take(emb_p, target, axis=0)                             # (B, T, Ep) bf16
    gathered = jnp.pad(gathered, ((0, Bp - B), (0, 0), (0, 0)))
    emb_rows = jnp.transpose(gathered, (1, 0, 2)).reshape(R, Ep)           # time-major
    if R1 != R:
        emb_rows = jnp.pad(emb_rows, ((0, R1 - R), (0, 0)))

    def cparams(sem):
        return pltpu.CompilerParams(dimension_semantics=sem, vmem_limit_bytes=vlim)

    # --- 1. batched input-side gate projections: (R, Ep) @ (3Hp, Ep)^T --- #
    gi = pl.pallas_call(
        _input_proj_kernel,
        grid=(R1 // Rt1,),
        in_specs=[pl.BlockSpec((Rt1, Ep), lambda i: (i, 0)),
                  pl.BlockSpec((H3, Ep), lambda i: (0, 0)),
                  pl.BlockSpec((1, H3), lambda i: (0, 0))],
        out_specs=pl.BlockSpec((Rt1, H3), lambda i: (i, 0)),
        out_shape=jax.ShapeDtypeStruct((R1, H3), bf16),
        compiler_params=cparams(("parallel",)),
    )(emb_rows, w_ih_p, bi_p)

    gi_t = gi[:R].reshape(T, Bp, H3)
    if Tp != T:
        gi_t = jnp.pad(gi_t, ((0, Tp - T), (0, 0), (0, 0)))

    # --- 2. time-blocked GRU recurrence, h carried in f32 VMEM scratch --- #
    hs = pl.pallas_call(
        _gru_kernel,
        grid=(Bblocks, Tp // Kt),
        in_specs=[pl.BlockSpec((Kt, Bb, H3), lambda bb, tt: (tt, bb, 0)),
                  pl.BlockSpec((Bb, Hp), lambda bb, tt: (bb, 0)),
                  pl.BlockSpec((H3, Hp), lambda bb, tt: (0, 0)),
                  pl.BlockSpec((1, Hp), lambda bb, tt: (0, 0))],
        out_specs=pl.BlockSpec((Kt, Bb, Hp), lambda bb, tt: (tt, bb, 0)),
        out_shape=jax.ShapeDtypeStruct((Tp, Bp, Hp), bf16),
        scratch_shapes=[pltpu.VMEM((Bb, Hp), f32)],
        compiler_params=cparams(("parallel", "arbitrary")),
    )(gi_t, h0, w_hh_p, bhn_p)

    hs_rows = hs[:T].reshape(R, Hp)
    if R3 != R:
        hs_rows = jnp.pad(hs_rows, ((0, R3 - R), (0, 0)))

    # --- 3. prehead + tied head + vocab-tiled two-pass log_softmax --- #
    logp = pl.pallas_call(
        _head_kernel,
        grid=(R3 // Rt, 2, Vp // Vt),
        in_specs=[pl.BlockSpec((Rt, Hp), lambda i, p, j: (i, 0)),
                  pl.BlockSpec((Ep, Hp), lambda i, p, j: (0, 0)),
                  pl.BlockSpec((1, Ep), lambda i, p, j: (0, 0)),
                  pl.BlockSpec((Vt, Ep), lambda i, p, j: (j, 0)),
                  pl.BlockSpec((1, Vt), lambda i, p, j: (0, j))],
        # pass 0 parks the output window at (i, 0) and never writes it, so only
        # pass 1 writes each (i, j) block to HBM (single, lane-dense writeback).
        out_specs=pl.BlockSpec((Rt, Vt), lambda i, p, j: (i, p * j)),
        out_shape=jax.ShapeDtypeStruct((R3, Vp), f32),
        scratch_shapes=[pltpu.VMEM((Rt, Ep), bf16),
                        pltpu.VMEM((Rt, 1), f32),
                        pltpu.VMEM((Rt, 1), f32)],
        compiler_params=cparams(("parallel", "arbitrary", "arbitrary")),
    )(hs_rows, wp_p, bp_p, emb_p, bh_p)

    # back to batch-first layout, drop row/vocab/batch padding
    return logp[:R, :V].reshape(T, Bp, V)[:, :B].transpose(1, 0, 2)        # (B, T, V)


# ------------------------- Pure-JAX reference ------------------------------ #
def decoder_reference(target, hidden, params):
    emb_table = params["embedding"]
    B, T = target.shape
    H = hidden.shape[-1]
    embedded = jnp.take(emb_table, target, axis=0)      # (B, T, E)
    h = hidden.reshape(B, H)
    w_ih, w_hh = params["gru_w_ih"], params["gru_w_hh"]
    b_ih, b_hh = params["gru_b_ih"], params["gru_b_hh"]

    def cell(h, x):
        gi = x @ w_ih.T + b_ih
        gh = h @ w_hh.T + b_hh
        r = jax.nn.sigmoid(gi[:, 0:H] + gh[:, 0:H])
        z = jax.nn.sigmoid(gi[:, H:2 * H] + gh[:, H:2 * H])
        n = jnp.tanh(gi[:, 2 * H:] + r * gh[:, 2 * H:])
        h_new = (1 - z) * n + z * h
        return h_new, h_new

    _, hs = lax.scan(cell, h, jnp.transpose(embedded, (1, 0, 2)))
    gru_out = jnp.transpose(hs, (1, 0, 2))              # (B, T, H)
    pre = gru_out @ params["prehead_w"].T + params["prehead_b"]
    logits = pre @ emb_table.T + params["head_b"]
    return jax.nn.log_softmax(logits, axis=2)


# --------------------------------- Main ------------------------------------ #
def init_params(key, vocab_size, hidden_size, embedding_size, padding_idx=3):
    ks = jax.random.split(key, 8)
    scale = 0.1
    emb = scale * jax.random.normal(ks[0], (vocab_size, embedding_size), jnp.float32)
    emb = emb.at[padding_idx].set(0.0)                  # nn.Embedding padding_idx
    return {
        "embedding": emb,
        "gru_w_ih": scale * jax.random.normal(ks[1], (3 * hidden_size, embedding_size), jnp.float32),
        "gru_w_hh": scale * jax.random.normal(ks[2], (3 * hidden_size, hidden_size), jnp.float32),
        "gru_b_ih": scale * jax.random.normal(ks[3], (3 * hidden_size,), jnp.float32),
        "gru_b_hh": scale * jax.random.normal(ks[4], (3 * hidden_size,), jnp.float32),
        "prehead_w": scale * jax.random.normal(ks[5], (embedding_size, hidden_size), jnp.float32),
        "prehead_b": scale * jax.random.normal(ks[6], (embedding_size,), jnp.float32),
        "head_b": scale * jax.random.normal(ks[7], (vocab_size,), jnp.float32),
    }


if __name__ == "__main__":
    B, T = 2, 8
    VOCAB, HIDDEN, EMB = 64, 32, 32

    key = jax.random.PRNGKey(0)
    k_tgt, k_hid, k_par = jax.random.split(key, 3)

    target = jax.random.randint(k_tgt, (B, T), 0, VOCAB, dtype=jnp.int32)
    hidden = 0.1 * jax.random.normal(k_hid, (1, B, HIDDEN), jnp.float32)
    params = init_params(k_par, VOCAB, HIDDEN, EMB)

    fwd = jax.jit(decoder_forward)
    out = jax.block_until_ready(fwd(target, hidden, params))
    ref = jax.block_until_ready(decoder_reference(target, hidden, params))

    assert out.shape == (B, T, VOCAB), out.shape
    # bf16 MXU operands (f32 accumulation) -> loosened parity tolerance.
    np.testing.assert_allclose(np.asarray(out), np.asarray(ref), rtol=2e-2, atol=2e-2)
    # log_softmax rows must sum to 1 in prob space (softmax math stays f32).
    np.testing.assert_allclose(np.exp(np.asarray(out)).sum(-1), 1.0, rtol=1e-4, atol=1e-4)

    print("KERNEL_OK")
</pallas_src>

<mosaic_0001>
module attributes {stable_mosaic.version = 11 : i64} {
  func.func @_gru_kernel(%arg0: i32, %arg1: i32, %arg2: memref<8x8x384xbf16, #tpu.memory_space<vmem>>, %arg3: memref<8x128xf32, #tpu.memory_space<vmem>>, %arg4: memref<384x128xbf16, #tpu.memory_space<vmem>>, %arg5: memref<1x128xf32, #tpu.memory_space<vmem>>, %arg6: memref<8x8x128xbf16, #tpu.memory_space<vmem>>, %arg7: memref<8x128xf32, #tpu.memory_space<vmem>>) attributes {dimension_semantics = [#tpu.dimension_semantics<parallel>, #tpu.dimension_semantics<arbitrary>], iteration_bounds = array<i64: 1, 1>, scalar_prefetch = 0 : i64, scratch_operands = 1 : i64, tpu.core_type = #tpu.core_type<tc>, window_params = [{transform_indices = @transform_0, window_bounds = array<i64: 8, 8, 384>}, {transform_indices = @transform_1, window_bounds = array<i64: 8, 128>}, {pipeline_mode = #tpu.pipeline_mode<synchronous>, transform_indices = @transform_2, window_bounds = array<i64: 384, 128>}, {pipeline_mode = #tpu.pipeline_mode<synchronous>, transform_indices = @transform_3, window_bounds = array<i64: 1, 128>}, {transform_indices = @transform_4, window_bounds = array<i64: 8, 8, 128>}]} {
    %c0_i32 = arith.constant 0 : i32
    %0 = arith.cmpi eq, %arg1, %c0_i32 : i32
    %1 = arith.extui %0 : i1 to i32
    %c0_i32_0 = arith.constant 0 : i32
    %2 = arith.cmpi ne, %1, %c0_i32_0 : i32
    scf.if %2 {
      %c0_72 = arith.constant 0 : index
      %c0_73 = arith.constant 0 : index
      %319 = vector.load %arg3[%c0_72, %c0_73] : memref<8x128xf32, #tpu.memory_space<vmem>>, vector<8x128xf32>
      %c0_74 = arith.constant 0 : index
      %c0_75 = arith.constant 0 : index
      %320 = vector.load %arg7[%c0_74, %c0_75] : memref<8x128xf32, #tpu.memory_space<vmem>>, vector<8x128xf32>
      tpu.vector_store %arg7[%c0_74, %c0_75], %319 {strides = array<i32>} : memref<8x128xf32, #tpu.memory_space<vmem>>, vector<8x128xf32>,
    } else {
    }
    %c0 = arith.constant 0 : index
    %c0_1 = arith.constant 0 : index
    %3 = vector.load %arg4[%c0, %c0_1] : memref<384x128xbf16, #tpu.memory_space<vmem>>, vector<384x128xbf16>
    %c0_2 = arith.constant 0 : index
    %c0_3 = arith.constant 0 : index
    %4 = vector.load %arg5[%c0_2, %c0_3] : memref<1x128xf32, #tpu.memory_space<vmem>>, vector<1x128xf32>
    %c0_4 = arith.constant 0 : index
    %c0_5 = arith.constant 0 : index
    %5 = vector.load %arg7[%c0_4, %c0_5] : memref<8x128xf32, #tpu.memory_space<vmem>>, vector<8x128xf32>
    %c0_i32_6 = arith.constant 0 : i32
    %6 = arith.index_cast %c0_i32_6 : i32 to index
    %c0_7 = arith.constant 0 : index
    %c0_8 = arith.constant 0 : index
    %7 = vector.load %arg2[%6, %c0_7, %c0_8] : memref<8x8x384xbf16, #tpu.memory_space<vmem>>, vector<1x8x384xbf16>
    %8 = vector.shape_cast %7 : vector<1x8x384xbf16> to vector<8x384xbf16>
    %9 = arith.extf %8 : vector<8x384xbf16> to vector<8x384xf32>
    %10 = arith.truncf %5 : vector<8x128xf32> to vector<8x128xbf16>
    %cst = arith.constant dense<0.000000e+00> : vector<8x384xf32>
    %11 = tpu.matmul %10, %3, %cst {dimension_numbers = #tpu.dot_dimension_numbers<[1], [1], [0], [0], [0, 0, 1, 0], [], []>} : vector<8x128xbf16>, vector<384x128xbf16>, vector<8x384xf32> -> vector<8x384xf32>
    %12 = vector.extract_strided_slice %9 {offsets = [0, 0], sizes = [8, 128], strides = [1, 1]} : vector<8x384xf32> to vector<8x128xf32>
    %13 = vector.extract_strided_slice %11 {offsets = [0, 0], sizes = [8, 128], strides = [1, 1]} : vector<8x384xf32> to vector<8x128xf32>
    %14 = arith.addf %12, %13 : vector<8x128xf32>
    %15 = arith.negf %14 : vector<8x128xf32>
    %16 = math.exp %15 : vector<8x128xf32>
    %cst_9 = arith.constant 1.000000e+00 : f32
    %17 = vector.broadcast %cst_9 : f32 to vector<8x128xf32>
    %18 = arith.addf %17, %16 : vector<8x128xf32>
    %19 = arith.divf %17, %18 : vector<8x128xf32>
    %20 = vector.extract_strided_slice %9 {offsets = [0, 128], sizes = [8, 128], strides = [1, 1]} : vector<8x384xf32> to vector<8x128xf32>
    %21 = vector.extract_strided_slice %11 {offsets = [0, 128], sizes = [8, 128], strides = [1, 1]} : vector<8x384xf32> to vector<8x128xf32>
    %22 = arith.addf %20, %21 : vector<8x128xf32>
    %23 = arith.negf %22 : vector<8x128xf32>
    %24 = math.exp %23 : vector<8x128xf32>
    %cst_10 = arith.constant 1.000000e+00 : f32
    %25 = vector.broadcast %cst_10 : f32 to vector<8x128xf32>
    %26 = arith.addf %25, %24 : vector<8x128xf32>
    %27 = arith.divf %25, %26 : vector<8x128xf32>
    %28 = vector.extract_strided_slice %9 {offsets = [0, 256], sizes = [8, 128], strides = [1, 1]} : vector<8x384xf32> to vector<8x128xf32>
    %29 = vector.extract_strided_slice %11 {offsets = [0, 256], sizes = [8, 128], strides = [1, 1]} : vector<8x384xf32> to vector<8x128xf32>
    %30 = vector.broadcast %4 : vector<1x128xf32> to vector<8x128xf32>
    %31 = arith.addf %29, %30 : vector<8x128xf32>
    %32 = arith.mulf %19, %31 : vector<8x128xf32>
    %33 = arith.addf %28, %32 : vector<8x128xf32>
    %34 = math.tanh %33 : vector<8x128xf32>
    %cst_11 = arith.constant 1.000000e+00 : f32
    %35 = vector.broadcast %cst_11 : f32 to vector<8x128xf32>
    %36 = arith.subf %35, %27 : vector<8x128xf32>
    %37 = arith.mulf %36, %34 : vector<8x128xf32>
    %38 = arith.mulf %27, %5 : vector<8x128xf32>
    %39 = arith.addf %37, %38 : vector<8x128xf32>
    %40 = arith.truncf %39 : vector<8x128xf32> to vector<8x128xbf16>
    %41 = arith.index_cast %c0_i32_6 : i32 to index
    %c0_12 = arith.constant 0 : index
    %c0_13 = arith.constant 0 : index
    %42 = vector.load %arg6[%41, %c0_12, %c0_13] : memref<8x8x128xbf16, #tpu.memory_space<vmem>>, vector<1x8x128xbf16>
    %43 = vector.shape_cast %42 : vector<1x8x128xbf16> to vector<8x128xbf16>
    %44 = vector.shape_cast %40 : vector<8x128xbf16> to vector<1x8x128xbf16>
    tpu.vector_store %arg6[%41, %c0_12, %c0_13], %44 {strides = array<i32>} : memref<8x8x128xbf16, #tpu.memory_space<vmem>>, vector<1x8x128xbf16>,
    %c1_i32 = arith.constant 1 : i32
    %45 = arith.index_cast %c1_i32 : i32 to index
    %c0_14 = arith.constant 0 : index
    %c0_15 = arith.constant 0 : index
    %46 = vector.load %arg2[%45, %c0_14, %c0_15] : memref<8x8x384xbf16, #tpu.memory_space<vmem>>, vector<1x8x384xbf16>
    %47 = vector.shape_cast %46 : vector<1x8x384xbf16> to vector<8x384xbf16>
    %48 = arith.extf %47 : vector<8x384xbf16> to vector<8x384xf32>
    %49 = arith.truncf %39 : vector<8x128xf32> to vector<8x128xbf16>
    %cst_16 = arith.constant dense<0.000000e+00> : vector<8x384xf32>
    %50 = tpu.matmul %49, %3, %cst_16 {dimension_numbers = #tpu.dot_dimension_numbers<[1], [1], [0], [0], [0, 0, 1, 0], [], []>} : vector<8x128xbf16>, vector<384x128xbf16>, vector<8x384xf32> -> vector<8x384xf32>
    %51 = vector.extract_strided_slice %48 {offsets = [0, 0], sizes = [8, 128], strides = [1, 1]} : vector<8x384xf32> to vector<8x128xf32>
    %52 = vector.extract_strided_slice %50 {offsets = [0, 0], sizes = [8, 128], strides = [1, 1]} : vector<8x384xf32> to vector<8x128xf32>
    %53 = arith.addf %51, %52 : vector<8x128xf32>
    %54 = arith.negf %53 : vector<8x128xf32>
    %55 = math.exp %54 : vector<8x128xf32>
    %cst_17 = arith.constant 1.000000e+00 : f32
    %56 = vector.broadcast %cst_17 : f32 to vector<8x128xf32>
    %57 = arith.addf %56, %55 : vector<8x128xf32>
    %58 = arith.divf %56, %57 : vector<8x128xf32>
    %59 = vector.extract_strided_slice %48 {offsets = [0, 128], sizes = [8, 128], strides = [1, 1]} : vector<8x384xf32> to vector<8x128xf32>
    %60 = vector.extract_strided_slice %50 {offsets = [0, 128], sizes = [8, 128], strides = [1, 1]} : vector<8x384xf32> to vector<8x128xf32>
    %61 = arith.addf %59, %60 : vector<8x128xf32>
    %62 = arith.negf %61 : vector<8x128xf32>
    %63 = math.exp %62 : vector<8x128xf32>
    %cst_18 = arith.constant 1.000000e+00 : f32
    %64 = vector.broadcast %cst_18 : f32 to vector<8x128xf32>
    %65 = arith.addf %64, %63 : vector<8x128xf32>
    %66 = arith.divf %64, %65 : vector<8x128xf32>
    %67 = vector.extract_strided_slice %48 {offsets = [0, 256], sizes = [8, 128], strides = [1, 1]} : vector<8x384xf32> to vector<8x128xf32>
    %68 = vector.extract_strided_slice %50 {offsets = [0, 256], sizes = [8, 128], strides = [1, 1]} : vector<8x384xf32> to vector<8x128xf32>
    %69 = vector.broadcast %4 : vector<1x128xf32> to vector<8x128xf32>
    %70 = arith.addf %68, %69 : vector<8x128xf32>
    %71 = arith.mulf %58, %70 : vector<8x128xf32>
    %72 = arith.addf %67, %71 : vector<8x128xf32>
    %73 = math.tanh %72 : vector<8x128xf32>
    %cst_19 = arith.constant 1.000000e+00 : f32
    %74 = vector.broadcast %cst_19 : f32 to vector<8x128xf32>
    %75 = arith.subf %74, %66 : vector<8x128xf32>
    %76 = arith.mulf %75, %73 : vector<8x128xf32>
    %77 = arith.mulf %66, %39 : vector<8x128xf32>
    %78 = arith.addf %76, %77 : vector<8x128xf32>
    %79 = arith.truncf %78 : vector<8x128xf32> to vector<8x128xbf16>
    %80 = arith.index_cast %c1_i32 : i32 to index
    %c0_20 = arith.constant 0 : index
    %c0_21 = arith.constant 0 : index
    %81 = vector.load %arg6[%80, %c0_20, %c0_21] : memref<8x8x128xbf16, #tpu.memory_space<vmem>>, vector<1x8x128xbf16>
    %82 = vector.shape_cast %81 : vector<1x8x128xbf16> to vector<8x128xbf16>
    %83 = vector.shape_cast %79 : vector<8x128xbf16> to vector<1x8x128xbf16>
    tpu.vector_store %arg6[%80, %c0_20, %c0_21], %83 {strides = array<i32>} : memref<8x8x128xbf16, #tpu.memory_space<vmem>>, vector<1x8x128xbf16>,
    %c2_i32 = arith.constant 2 : i32
    %84 = arith.index_cast %c2_i32 : i32 to index
    %c0_22 = arith.constant 0 : index
    %c0_23 = arith.constant 0 : index
    %85 = vector.load %arg2[%84, %c0_22, %c0_23] : memref<8x8x384xbf16, #tpu.memory_space<vmem>>, vector<1x8x384xbf16>
    %86 = vector.shape_cast %85 : vector<1x8x384xbf16> to vector<8x384xbf16>
    %87 = arith.extf %86 : vector<8x384xbf16> to vector<8x384xf32>
    %88 = arith.truncf %78 : vector<8x128xf32> to vector<8x128xbf16>
    %cst_24 = arith.constant dense<0.000000e+00> : vector<8x384xf32>
    %89 = tpu.matmul %88, %3, %cst_24 {dimension_numbers = #tpu.dot_dimension_numbers<[1], [1], [0], [0], [0, 0, 1, 0], [], []>} : vector<8x128xbf16>, vector<384x128xbf16>, vector<8x384xf32> -> vector<8x384xf32>
    %90 = vector.extract_strided_slice %87 {offsets = [0, 0], sizes = [8, 128], strides = [1, 1]} : vector<8x384xf32> to vector<8x128xf32>
    %91 = vector.extract_strided_slice %89 {offsets = [0, 0], sizes = [8, 128], strides = [1, 1]} : vector<8x384xf32> to vector<8x128xf32>
    %92 = arith.addf %90, %91 : vector<8x128xf32>
    %93 = arith.negf %92 : vector<8x128xf32>
    %94 = math.exp %93 : vector<8x128xf32>
    %cst_25 = arith.constant 1.000000e+00 : f32
    %95 = vector.broadcast %cst_25 : f32 to vector<8x128xf32>
    %96 = arith.addf %95, %94 : vector<8x128xf32>
    %97 = arith.divf %95, %96 : vector<8x128xf32>
    %98 = vector.extract_strided_slice %87 {offsets = [0, 128], sizes = [8, 128], strides = [1, 1]} : vector<8x384xf32> to vector<8x128xf32>
    %99 = vector.extract_strided_slice %89 {offsets = [0, 128], sizes = [8, 128], strides = [1, 1]} : vector<8x384xf32> to vector<8x128xf32>
    %100 = arith.addf %98, %99 : vector<8x128xf32>
    %101 = arith.negf %100 : vector<8x128xf32>
    %102 = math.exp %101 : vector<8x128xf32>
    %cst_26 = arith.constant 1.000000e+00 : f32
    %103 = vector.broadcast %cst_26 : f32 to vector<8x128xf32>
    %104 = arith.addf %103, %102 : vector<8x128xf32>
    %105 = arith.divf %103, %104 : vector<8x128xf32>
    %106 = vector.extract_strided_slice %87 {offsets = [0, 256], sizes = [8, 128], strides = [1, 1]} : vector<8x384xf32> to vector<8x128xf32>
    %107 = vector.extract_strided_slice %89 {offsets = [0, 256], sizes = [8, 128], strides = [1, 1]} : vector<8x384xf32> to vector<8x128xf32>
    %108 = vector.broadcast %4 : vector<1x128xf32> to vector<8x128xf32>
    %109 = arith.addf %107, %108 : vector<8x128xf32>
    %110 = arith.mulf %97, %109 : vector<8x128xf32>
    %111 = arith.addf %106, %110 : vector<8x128xf32>
    %112 = math.tanh %111 : vector<8x128xf32>
    %cst_27 = arith.constant 1.000000e+00 : f32
    %113 = vector.broadcast %cst_27 : f32 to vector<8x128xf32>
    %114 = arith.subf %113, %105 : vector<8x128xf32>
    %115 = arith.mulf %114, %112 : vector<8x128xf32>
    %116 = arith.mulf %105, %78 : vector<8x128xf32>
    %117 = arith.addf %115, %116 : vector<8x128xf32>
    %118 = arith.truncf %117 : vector<8x128xf32> to vector<8x128xbf16>
    %119 = arith.index_cast %c2_i32 : i32 to index
    %c0_28 = arith.constant 0 : index
    %c0_29 = arith.constant 0 : index
    %120 = vector.load %arg6[%119, %c0_28, %c0_29] : memref<8x8x128xbf16, #tpu.memory_space<vmem>>, vector<1x8x128xbf16>
    %121 = vector.shape_cast %120 : vector<1x8x128xbf16> to vector<8x128xbf16>
    %122 = vector.shape_cast %118 : vector<8x128xbf16> to vector<1x8x128xbf16>
    tpu.vector_store %arg6[%119, %c0_28, %c0_29], %122 {strides = array<i32>} : memref<8x8x128xbf16, #tpu.memory_space<vmem>>, vector<1x8x128xbf16>,
    %c3_i32 = arith.constant 3 : i32
    %123 = arith.index_cast %c3_i32 : i32 to index
    %c0_30 = arith.constant 0 : index
    %c0_31 = arith.constant 0 : index
    %124 = vector.load %arg2[%123, %c0_30, %c0_31] : memref<8x8x384xbf16, #tpu.memory_space<vmem>>, vector<1x8x384xbf16>
    %125 = vector.shape_cast %124 : vector<1x8x384xbf16> to vector<8x384xbf16>
    %126 = arith.extf %125 : vector<8x384xbf16> to vector<8x384xf32>
    %127 = arith.truncf %117 : vector<8x128xf32> to vector<8x128xbf16>
    %cst_32 = arith.constant dense<0.000000e+00> : vector<8x384xf32>
    %128 = tpu.matmul %127, %3, %cst_32 {dimension_numbers = #tpu.dot_dimension_numbers<[1], [1], [0], [0], [0, 0, 1, 0], [], []>} : vector<8x128xbf16>, vector<384x128xbf16>, vector<8x384xf32> -> vector<8x384xf32>
    %129 = vector.extract_strided_slice %126 {offsets = [0, 0], sizes = [8, 128], strides = [1, 1]} : vector<8x384xf32> to vector<8x128xf32>
    %130 = vector.extract_strided_slice %128 {offsets = [0, 0], sizes = [8, 128], strides = [1, 1]} : vector<8x384xf32> to vector<8x128xf32>
    %131 = arith.addf %129, %130 : vector<8x128xf32>
    %132 = arith.negf %131 : vector<8x128xf32>
    %133 = math.exp %132 : vector<8x128xf32>
    %cst_33 = arith.constant 1.000000e+00 : f32
    %134 = vector.broadcast %cst_33 : f32 to vector<8x128xf32>
    %135 = arith.addf %134, %133 : vector<8x128xf32>
    %136 = arith.divf %134, %135 : vector<8x128xf32>
    %137 = vector.extract_strided_slice %126 {offsets = [0, 128], sizes = [8, 128], strides = [1, 1]} : vector<8x384xf32> to vector<8x128xf32>
    %138 = vector.extract_strided_slice %128 {offsets = [0, 128], sizes = [8, 128], strides = [1, 1]} : vector<8x384xf32> to vector<8x128xf32>
    %139 = arith.addf %137, %138 : vector<8x128xf32>
    %140 = arith.negf %139 : vector<8x128xf32>
    %141 = math.exp %140 : vector<8x128xf32>
    %cst_34 = arith.constant 1.000000e+00 : f32
    %142 = vector.broadcast %cst_34 : f32 to vector<8x128xf32>
    %143 = arith.addf %142, %141 : vector<8x128xf32>
    %144 = arith.divf %142, %143 : vector<8x128xf32>
    %145 = vector.extract_strided_slice %126 {offsets = [0, 256], sizes = [8, 128], strides = [1, 1]} : vector<8x384xf32> to vector<8x128xf32>
    %146 = vector.extract_strided_slice %128 {offsets = [0, 256], sizes = [8, 128], strides = [1, 1]} : vector<8x384xf32> to vector<8x128xf32>
    %147 = vector.broadcast %4 : vector<1x128xf32> to vector<8x128xf32>
    %148 = arith.addf %146, %147 : vector<8x128xf32>
    %149 = arith.mulf %136, %148 : vector<8x128xf32>
    %150 = arith.addf %145, %149 : vector<8x128xf32>
    %151 = math.tanh %150 : vector<8x128xf32>
    %cst_35 = arith.constant 1.000000e+00 : f32
    %152 = vector.broadcast %cst_35 : f32 to vector<8x128xf32>
    %153 = arith.subf %152, %144 : vector<8x128xf32>
    %154 = arith.mulf %153, %151 : vector<8x128xf32>
    %155 = arith.mulf %144, %117 : vector<8x128xf32>
    %156 = arith.addf %154, %155 : vector<8x128xf32>
    %157 = arith.truncf %156 : vector<8x128xf32> to vector<8x128xbf16>
    %158 = arith.index_cast %c3_i32 : i32 to index
    %c0_36 = arith.constant 0 : index
    %c0_37 = arith.constant 0 : index
    %159 = vector.load %arg6[%158, %c0_36, %c0_37] : memref<8x8x128xbf16, #tpu.memory_space<vmem>>, vector<1x8x128xbf16>
    %160 = vector.shape_cast %159 : vector<1x8x128xbf16> to vector<8x128xbf16>
    %161 = vector.shape_cast %157 : vector<8x128xbf16> to vector<1x8x128xbf16>
    tpu.vector_store %arg6[%158, %c0_36, %c0_37], %161 {strides = array<i32>} : memref<8x8x128xbf16, #tpu.memory_space<vmem>>, vector<1x8x128xbf16>,
    %c4_i32 = arith.constant 4 : i32
    %162 = arith.index_cast %c4_i32 : i32 to index
    %c0_38 = arith.constant 0 : index
    %c0_39 = arith.constant 0 : index
    %163 = vector.load %arg2[%162, %c0_38, %c0_39] : memref<8x8x384xbf16, #tpu.memory_space<vmem>>, vector<1x8x384xbf16>
    %164 = vector.shape_cast %163 : vector<1x8x384xbf16> to vector<8x384xbf16>
    %165 = arith.extf %164 : vector<8x384xbf16> to vector<8x384xf32>
    %166 = arith.truncf %156 : vector<8x128xf32> to vector<8x128xbf16>
    %cst_40 = arith.constant dense<0.000000e+00> : vector<8x384xf32>
    %167 = tpu.matmul %166, %3, %cst_40 {dimension_numbers = #tpu.dot_dimension_numbers<[1], [1], [0], [0], [0, 0, 1, 0], [], []>} : vector<8x128xbf16>, vector<384x128xbf16>, vector<8x384xf32> -> vector<8x384xf32>
    %168 = vector.extract_strided_slice %165 {offsets = [0, 0], sizes = [8, 128], strides = [1, 1]} : vector<8x384xf32> to vector<8x128xf32>
    %169 = vector.extract_strided_slice %167 {offsets = [0, 0], sizes = [8, 128], strides = [1, 1]} : vector<8x384xf32> to vector<8x128xf32>
    %170 = arith.addf %168, %169 : vector<8x128xf32>
    %171 = arith.negf %170 : vector<8x128xf32>
    %172 = math.exp %171 : vector<8x128xf32>
    %cst_41 = arith.constant 1.000000e+00 : f32
    %173 = vector.broadcast %cst_41 : f32 to vector<8x128xf32>
    %174 = arith.addf %173, %172 : vector<8x128xf32>
    %175 = arith.divf %173, %174 : vector<8x128xf32>
    %176 = vector.extract_strided_slice %165 {offsets = [0, 128], sizes = [8, 128], strides = [1, 1]} : vector<8x384xf32> to vector<8x128xf32>
    %177 = vector.extract_strided_slice %167 {offsets = [0, 128], sizes = [8, 128], strides = [1, 1]} : vector<8x384xf32> to vector<8x128xf32>
    %178 = arith.addf %176, %177 : vector<8x128xf32>
    %179 = arith.negf %178 : vector<8x128xf32>
    %180 = math.exp %179 : vector<8x128xf32>
    %cst_42 = arith.constant 1.000000e+00 : f32
    %181 = vector.broadcast %cst_42 : f32 to vector<8x128xf32>
    %182 = arith.addf %181, %180 : vector<8x128xf32>
    %183 = arith.divf %181, %182 : vector<8x128xf32>
    %184 = vector.extract_strided_slice %165 {offsets = [0, 256], sizes = [8, 128], strides = [1, 1]} : vector<8x384xf32> to vector<8x128xf32>
    %185 = vector.extract_strided_slice %167 {offsets = [0, 256], sizes = [8, 128], strides = [1, 1]} : vector<8x384xf32> to vector<8x128xf32>
    %186 = vector.broadcast %4 : vector<1x128xf32> to vector<8x128xf32>
    %187 = arith.addf %185, %186 : vector<8x128xf32>
    %188 = arith.mulf %175, %187 : vector<8x128xf32>
    %189 = arith.addf %184, %188 : vector<8x128xf32>
    %190 = math.tanh %189 : vector<8x128xf32>
    %cst_43 = arith.constant 1.000000e+00 : f32
    %191 = vector.broadcast %cst_43 : f32 to vector<8x128xf32>
    %192 = arith.subf %191, %183 : vector<8x128xf32>
    %193 = arith.mulf %192, %190 : vector<8x128xf32>
    %194 = arith.mulf %183, %156 : vector<8x128xf32>
    %195 = arith.addf %193, %194 : vector<8x128xf32>
    %196 = arith.truncf %195 : vector<8x128xf32> to vector<8x128xbf16>
    %197 = arith.index_cast %c4_i32 : i32 to index
    %c0_44 = arith.constant 0 : index
    %c0_45 = arith.constant 0 : index
    %198 = vector.load %arg6[%197, %c0_44, %c0_45] : memref<8x8x128xbf16, #tpu.memory_space<vmem>>, vector<1x8x128xbf16>
    %199 = vector.shape_cast %198 : vector<1x8x128xbf16> to vector<8x128xbf16>
    %200 = vector.shape_cast %196 : vector<8x128xbf16> to vector<1x8x128xbf16>
    tpu.vector_store %arg6[%197, %c0_44, %c0_45], %200 {strides = array<i32>} : memref<8x8x128xbf16, #tpu.memory_space<vmem>>, vector<1x8x128xbf16>,
    %c5_i32 = arith.constant 5 : i32
    %201 = arith.index_cast %c5_i32 : i32 to index
    %c0_46 = arith.constant 0 : index
    %c0_47 = arith.constant 0 : index
    %202 = vector.load %arg2[%201, %c0_46, %c0_47] : memref<8x8x384xbf16, #tpu.memory_space<vmem>>, vector<1x8x384xbf16>
    %203 = vector.shape_cast %202 : vector<1x8x384xbf16> to vector<8x384xbf16>
    %204 = arith.extf %203 : vector<8x384xbf16> to vector<8x384xf32>
    %205 = arith.truncf %195 : vector<8x128xf32> to vector<8x128xbf16>
    %cst_48 = arith.constant dense<0.000000e+00> : vector<8x384xf32>
    %206 = tpu.matmul %205, %3, %cst_48 {dimension_numbers = #tpu.dot_dimension_numbers<[1], [1], [0], [0], [0, 0, 1, 0], [], []>} : vector<8x128xbf16>, vector<384x128xbf16>, vector<8x384xf32> -> vector<8x384xf32>
    %207 = vector.extract_strided_slice %204 {offsets = [0, 0], sizes = [8, 128], strides = [1, 1]} : vector<8x384xf32> to vector<8x128xf32>
    %208 = vector.extract_strided_slice %206 {offsets = [0, 0], sizes = [8, 128], strides = [1, 1]} : vector<8x384xf32> to vector<8x128xf32>
    %209 = arith.addf %207, %208 : vector<8x128xf32>
    %210 = arith.negf %209 : vector<8x128xf32>
    %211 = math.exp %210 : vector<8x128xf32>
    %cst_49 = arith.constant 1.000000e+00 : f32
    %212 = vector.broadcast %cst_49 : f32 to vector<8x128xf32>
    %213 = arith.addf %212, %211 : vector<8x128xf32>
    %214 = arith.divf %212, %213 : vector<8x128xf32>
    %215 = vector.extract_strided_slice %204 {offsets = [0, 128], sizes = [8, 128], strides = [1, 1]} : vector<8x384xf32> to vector<8x128xf32>
    %216 = vector.extract_strided_slice %206 {offsets = [0, 128], sizes = [8, 128], strides = [1, 1]} : vector<8x384xf32> to vector<8x128xf32>
    %217 = arith.addf %215, %216 : vector<8x128xf32>
    %218 = arith.negf %217 : vector<8x128xf32>
    %219 = math.exp %218 : vector<8x128xf32>
    %cst_50 = arith.constant 1.000000e+00 : f32
    %220 = vector.broadcast %cst_50 : f32 to vector<8x128xf32>
    %221 = arith.addf %220, %219 : vector<8x128xf32>
    %222 = arith.divf %220, %221 : vector<8x128xf32>
    %223 = vector.extract_strided_slice %204 {offsets = [0, 256], sizes = [8, 128], strides = [1, 1]} : vector<8x384xf32> to vector<8x128xf32>
    %224 = vector.extract_strided_slice %206 {offsets = [0, 256], sizes = [8, 128], strides = [1, 1]} : vector<8x384xf32> to vector<8x128xf32>
    %225 = vector.broadcast %4 : vector<1x128xf32> to vector<8x128xf32>
    %226 = arith.addf %224, %225 : vector<8x128xf32>
    %227 = arith.mulf %214, %226 : vector<8x128xf32>
    %228 = arith.addf %223, %227 : vector<8x128xf32>
    %229 = math.tanh %228 : vector<8x128xf32>
    %cst_51 = arith.constant 1.000000e+00 : f32
    %230 = vector.broadcast %cst_51 : f32 to vector<8x128xf32>
    %231 = arith.subf %230, %222 : vector<8x128xf32>
    %232 = arith.mulf %231, %229 : vector<8x128xf32>
    %233 = arith.mulf %222, %195 : vector<8x128xf32>
    %234 = arith.addf %232, %233 : vector<8x128xf32>
    %235 = arith.truncf %234 : vector<8x128xf32> to vector<8x128xbf16>
    %236 = arith.index_cast %c5_i32 : i32 to index
    %c0_52 = arith.constant 0 : index
    %c0_53 = arith.constant 0 : index
    %237 = vector.load %arg6[%236, %c0_52, %c0_53] : memref<8x8x128xbf16, #tpu.memory_space<vmem>>, vector<1x8x128xbf16>
    %238 = vector.shape_cast %237 : vector<1x8x128xbf16> to vector<8x128xbf16>
    %239 = vector.shape_cast %235 : vector<8x128xbf16> to vector<1x8x128xbf16>
    tpu.vector_store %arg6[%236, %c0_52, %c0_53], %239 {strides = array<i32>} : memref<8x8x128xbf16, #tpu.memory_space<vmem>>, vector<1x8x128xbf16>,
    %c6_i32 = arith.constant 6 : i32
    %240 = arith.index_cast %c6_i32 : i32 to index
    %c0_54 = arith.constant 0 : index
    %c0_55 = arith.constant 0 : index
    %241 = vector.load %arg2[%240, %c0_54, %c0_55] : memref<8x8x384xbf16, #tpu.memory_space<vmem>>, vector<1x8x384xbf16>
    %242 = vector.shape_cast %241 : vector<1x8x384xbf16> to vector<8x384xbf16>
    %243 = arith.extf %242 : vector<8x384xbf16> to vector<8x384xf32>
    %244 = arith.truncf %234 : vector<8x128xf32> to vector<8x128xbf16>
    %cst_56 = arith.constant dense<0.000000e+00> : vector<8x384xf32>
    %245 = tpu.matmul %244, %3, %cst_56 {dimension_numbers = #tpu.dot_dimension_numbers<[1], [1], [0], [0], [0, 0, 1, 0], [], []>} : vector<8x128xbf16>, vector<384x128xbf16>, vector<8x384xf32> -> vector<8x384xf32>
    %246 = vector.extract_strided_slice %243 {offsets = [0, 0], sizes = [8, 128], strides = [1, 1]} : vector<8x384xf32> to vector<8x128xf32>
    %247 = vector.extract_strided_slice %245 {offsets = [0, 0], sizes = [8, 128], strides = [1, 1]} : vector<8x384xf32> to vector<8x128xf32>
    %248 = arith.addf %246, %247 : vector<8x128xf32>
    %249 = arith.negf %248 : vector<8x128xf32>
    %250 = math.exp %249 : vector<8x128xf32>
    %cst_57 = arith.constant 1.000000e+00 : f32
    %251 = vector.broadcast %cst_57 : f32 to vector<8x128xf32>
    %252 = arith.addf %251, %250 : vector<8x128xf32>
    %253 = arith.divf %251, %252 : vector<8x128xf32>
    %254 = vector.extract_strided_slice %243 {offsets = [0, 128], sizes = [8, 128], strides = [1, 1]} : vector<8x384xf32> to vector<8x128xf32>
    %255 = vector.extract_strided_slice %245 {offsets = [0, 128], sizes = [8, 128], strides = [1, 1]} : vector<8x384xf32> to vector<8x128xf32>
    %256 = arith.addf %254, %255 : vector<8x128xf32>
    %257 = arith.negf %256 : vector<8x128xf32>
    %258 = math.exp %257 : vector<8x128xf32>
    %cst_58 = arith.constant 1.000000e+00 : f32
    %259 = vector.broadcast %cst_58 : f32 to vector<8x128xf32>
    %260 = arith.addf %259, %258 : vector<8x128xf32>
    %261 = arith.divf %259, %260 : vector<8x128xf32>
    %262 = vector.extract_strided_slice %243 {offsets = [0, 256], sizes = [8, 128], strides = [1, 1]} : vector<8x384xf32> to vector<8x128xf32>
    %263 = vector.extract_strided_slice %245 {offsets = [0, 256], sizes = [8, 128], strides = [1, 1]} : vector<8x384xf32> to vector<8x128xf32>
    %264 = vector.broadcast %4 : vector<1x128xf32> to vector<8x128xf32>
    %265 = arith.addf %263, %264 : vector<8x128xf32>
    %266 = arith.mulf %253, %265 : vector<8x128xf32>
    %267 = arith.addf %262, %266 : vector<8x128xf32>
    %268 = math.tanh %267 : vector<8x128xf32>
    %cst_59 = arith.constant 1.000000e+00 : f32
    %269 = vector.broadcast %cst_59 : f32 to vector<8x128xf32>
    %270 = arith.subf %269, %261 : vector<8x128xf32>
    %271 = arith.mulf %270, %268 : vector<8x128xf32>
    %272 = arith.mulf %261, %234 : vector<8x128xf32>
    %273 = arith.addf %271, %272 : vector<8x128xf32>
    %274 = arith.truncf %273 : vector<8x128xf32> to vector<8x128xbf16>
    %275 = arith.index_cast %c6_i32 : i32 to index
    %c0_60 = arith.constant 0 : index
    %c0_61 = arith.constant 0 : index
    %276 = vector.load %arg6[%275, %c0_60, %c0_61] : memref<8x8x128xbf16, #tpu.memory_space<vmem>>, vector<1x8x128xbf16>
    %277 = vector.shape_cast %276 : vector<1x8x128xbf16> to vector<8x128xbf16>
    %278 = vector.shape_cast %274 : vector<8x128xbf16> to vector<1x8x128xbf16>
    tpu.vector_store %arg6[%275, %c0_60, %c0_61], %278 {strides = array<i32>} : memref<8x8x128xbf16, #tpu.memory_space<vmem>>, vector<1x8x128xbf16>,
    %c7_i32 = arith.constant 7 : i32
    %279 = arith.index_cast %c7_i32 : i32 to index
    %c0_62 = arith.constant 0 : index
    %c0_63 = arith.constant 0 : index
    %280 = vector.load %arg2[%279, %c0_62, %c0_63] : memref<8x8x384xbf16, #tpu.memory_space<vmem>>, vector<1x8x384xbf16>
    %281 = vector.shape_cast %280 : vector<1x8x384xbf16> to vector<8x384xbf16>
    %282 = arith.extf %281 : vector<8x384xbf16> to vector<8x384xf32>
    %283 = arith.truncf %273 : vector<8x128xf32> to vector<8x128xbf16>
    %cst_64 = arith.constant dense<0.000000e+00> : vector<8x384xf32>
    %284 = tpu.matmul %283, %3, %cst_64 {dimension_numbers = #tpu.dot_dimension_numbers<[1], [1], [0], [0], [0, 0, 1, 0], [], []>} : vector<8x128xbf16>, vector<384x128xbf16>, vector<8x384xf32> -> vector<8x384xf32>
    %285 = vector.extract_strided_slice %282 {offsets = [0, 0], sizes = [8, 128], strides = [1, 1]} : vector<8x384xf32> to vector<8x128xf32>
    %286 = vector.extract_strided_slice %284 {offsets = [0, 0], sizes = [8, 128], strides = [1, 1]} : vector<8x384xf32> to vector<8x128xf32>
    %287 = arith.addf %285, %286 : vector<8x128xf32>
    %288 = arith.negf %287 : vector<8x128xf32>
    %289 = math.exp %288 : vector<8x128xf32>
    %cst_65 = arith.constant 1.000000e+00 : f32
    %290 = vector.broadcast %cst_65 : f32 to vector<8x128xf32>
    %291 = arith.addf %290, %289 : vector<8x128xf32>
    %292 = arith.divf %290, %291 : vector<8x128xf32>
    %293 = vector.extract_strided_slice %282 {offsets = [0, 128], sizes = [8, 128], strides = [1, 1]} : vector<8x384xf32> to vector<8x128xf32>
    %294 = vector.extract_strided_slice %284 {offsets = [0, 128], sizes = [8, 128], strides = [1, 1]} : vector<8x384xf32> to vector<8x128xf32>
    %295 = arith.addf %293, %294 : vector<8x128xf32>
    %296 = arith.negf %295 : vector<8x128xf32>
    %297 = math.exp %296 : vector<8x128xf32>
    %cst_66 = arith.constant 1.000000e+00 : f32
    %298 = vector.broadcast %cst_66 : f32 to vector<8x128xf32>
    %299 = arith.addf %298, %297 : vector<8x128xf32>
    %300 = arith.divf %298, %299 : vector<8x128xf32>
    %301 = vector.extract_strided_slice %282 {offsets = [0, 256], sizes = [8, 128], strides = [1, 1]} : vector<8x384xf32> to vector<8x128xf32>
    %302 = vector.extract_strided_slice %284 {offsets = [0, 256], sizes = [8, 128], strides = [1, 1]} : vector<8x384xf32> to vector<8x128xf32>
    %303 = vector.broadcast %4 : vector<1x128xf32> to vector<8x128xf32>
    %304 = arith.addf %302, %303 : vector<8x128xf32>
    %305 = arith.mulf %292, %304 : vector<8x128xf32>
    %306 = arith.addf %301, %305 : vector<8x128xf32>
    %307 = math.tanh %306 : vector<8x128xf32>
    %cst_67 = arith.constant 1.000000e+00 : f32
    %308 = vector.broadcast %cst_67 : f32 to vector<8x128xf32>
    %309 = arith.subf %308, %300 : vector<8x128xf32>
    %310 = arith.mulf %309, %307 : vector<8x128xf32>
    %311 = arith.mulf %300, %273 : vector<8x128xf32>
    %312 = arith.addf %310, %311 : vector<8x128xf32>
    %313 = arith.truncf %312 : vector<8x128xf32> to vector<8x128xbf16>
    %314 = arith.index_cast %c7_i32 : i32 to index
    %c0_68 = arith.constant 0 : index
    %c0_69 = arith.constant 0 : index
    %315 = vector.load %arg6[%314, %c0_68, %c0_69] : memref<8x8x128xbf16, #tpu.memory_space<vmem>>, vector<1x8x128xbf16>
    %316 = vector.shape_cast %315 : vector<1x8x128xbf16> to vector<8x128xbf16>
    %317 = vector.shape_cast %313 : vector<8x128xbf16> to vector<1x8x128xbf16>
    tpu.vector_store %arg6[%314, %c0_68, %c0_69], %317 {strides = array<i32>} : memref<8x8x128xbf16, #tpu.memory_space<vmem>>, vector<1x8x128xbf16>,
    %c8_i32 = arith.constant 8 : i32
    %c0_70 = arith.constant 0 : index
    %c0_71 = arith.constant 0 : index
    %318 = vector.load %arg7[%c0_70, %c0_71] : memref<8x128xf32, #tpu.memory_space<vmem>>, vector<8x128xf32>
    tpu.vector_store %arg7[%c0_70, %c0_71], %312 {strides = array<i32>} : memref<8x128xf32, #tpu.memory_space<vmem>>, vector<8x128xf32>,
    return
  }
  func.func @transform_0(%arg0: i32, %arg1: i32) -> (i32, i32, i32) {
    %c0_i32 = arith.constant 0 : i32
    %c0_i32_0 = arith.constant 0 : i32
    return %arg1, %arg0, %c0_i32 : i32, i32, i32
  }
  func.func @transform_1(%arg0: i32, %arg1: i32) -> (i32, i32) {
    %c0_i32 = arith.constant 0 : i32
    %c0_i32_0 = arith.constant 0 : i32
    return %arg0, %c0_i32 : i32, i32
  }
  func.func @transform_2(%arg0: i32, %arg1: i32) -> (i32, i32) {
    %c0_i32 = arith.constant 0 : i32
    %c0_i32_0 = arith.constant 0 : i32
    %c0_i32_1 = arith.constant 0 : i32
    return %c0_i32, %c0_i32_0 : i32, i32
  }
  func.func @transform_3(%arg0: i32, %arg1: i32) -> (i32, i32) {
    %c0_i32 = arith.constant 0 : i32
    %c0_i32_0 = arith.constant 0 : i32
    %c0_i32_1 = arith.constant 0 : i32
    return %c0_i32, %c0_i32_0 : i32, i32
  }
  func.func @transform_4(%arg0: i32, %arg1: i32) -> (i32, i32, i32) {
    %c0_i32 = arith.constant 0 : i32
    %c0_i32_0 = arith.constant 0 : i32
    return %arg1, %arg0, %c0_i32 : i32, i32, i32
  }
}

module attributes {stable_mosaic.version = 11 : i64} {
  func.func @_input_proj_kernel(%arg0: i32, %arg1: memref<64x128xbf16, #tpu.memory_space<vmem>>, %arg2: memref<384x128xbf16, #tpu.memory_space<vmem>>, %arg3: memref<1x384xf32, #tpu.memory_space<vmem>>, %arg4: memref<64x384xbf16, #tpu.memory_space<vmem>>) attributes {dimension_semantics = [#tpu.dimension_semantics<parallel>], iteration_bounds = array<i64: 1>, scalar_prefetch = 0 : i64, scratch_operands = 0 : i64, tpu.core_type = #tpu.core_type<tc>, window_params = [{transform_indices = @transform_0, window_bounds = array<i64: 64, 128>}, {pipeline_mode = #tpu.pipeline_mode<synchronous>, transform_indices = @transform_1, window_bounds = array<i64: 384, 128>}, {pipeline_mode = #tpu.pipeline_mode<synchronous>, transform_indices = @transform_2, window_bounds = array<i64: 1, 384>}, {transform_indices = @transform_3, window_bounds = array<i64: 64, 384>}]} {
    %c0 = arith.constant 0 : index
    %c0_0 = arith.constant 0 : index
    %0 = vector.load %arg1[%c0, %c0_0] : memref<64x128xbf16, #tpu.memory_space<vmem>>, vector<64x128xbf16>
    %c0_1 = arith.constant 0 : index
    %c0_2 = arith.constant 0 : index
    %1 = vector.load %arg2[%c0_1, %c0_2] : memref<384x128xbf16, #tpu.memory_space<vmem>>, vector<384x128xbf16>
    %cst = arith.constant dense<0.000000e+00> : vector<64x384xf32>
    %2 = tpu.matmul %0, %1, %cst {dimension_numbers = #tpu.dot_dimension_numbers<[1], [1], [0], [0], [0, 0, 1, 0], [], []>} : vector<64x128xbf16>, vector<384x128xbf16>, vector<64x384xf32> -> vector<64x384xf32>
    %c0_3 = arith.constant 0 : index
    %c0_4 = arith.constant 0 : index
    %3 = vector.load %arg3[%c0_3, %c0_4] : memref<1x384xf32, #tpu.memory_space<vmem>>, vector<1x384xf32>
    %4 = vector.broadcast %3 : vector<1x384xf32> to vector<64x384xf32>
    %5 = arith.addf %2, %4 : vector<64x384xf32>
    %6 = arith.truncf %5 : vector<64x384xf32> to vector<64x384xbf16>
    %c0_5 = arith.constant 0 : index
    %c0_6 = arith.constant 0 : index
    %7 = vector.load %arg4[%c0_5, %c0_6] : memref<64x384xbf16, #tpu.memory_space<vmem>>, vector<64x384xbf16>
    tpu.vector_store %arg4[%c0_5, %c0_6], %6 {strides = array<i32>} : memref<64x384xbf16, #tpu.memory_space<vmem>>, vector<64x384xbf16>,
    return
  }
  func.func @transform_0(%arg0: i32) -> (i32, i32) {
    %c0_i32 = arith.constant 0 : i32
    %c0_i32_0 = arith.constant 0 : i32
    return %arg0, %c0_i32 : i32, i32
  }
  func.func @transform_1(%arg0: i32) -> (i32, i32) {
    %c0_i32 = arith.constant 0 : i32
    %c0_i32_0 = arith.constant 0 : i32
    %c0_i32_1 = arith.constant 0 : i32
    return %c0_i32, %c0_i32_0 : i32, i32
  }
  func.func @transform_2(%arg0: i32) -> (i32, i32) {
    %c0_i32 = arith.constant 0 : i32
    %c0_i32_0 = arith.constant 0 : i32
    %c0_i32_1 = arith.constant 0 : i32
    return %c0_i32, %c0_i32_0 : i32, i32
  }
  func.func @transform_3(%arg0: i32) -> (i32, i32) {
    %c0_i32 = arith.constant 0 : i32
    %c0_i32_0 = arith.constant 0 : i32
    return %arg0, %c0_i32 : i32, i32
  }
}

module attributes {stable_mosaic.version = 11 : i64} {
  func.func @_head_kernel(%arg0: i32, %arg1: i32, %arg2: i32, %arg3: memref<64x128xbf16, #tpu.memory_space<vmem>>, %arg4: memref<128x128xbf16, #tpu.memory_space<vmem>>, %arg5: memref<1x128xf32, #tpu.memory_space<vmem>>, %arg6: memref<128x128xbf16, #tpu.memory_space<vmem>>, %arg7: memref<1x128xf32, #tpu.memory_space<vmem>>, %arg8: memref<64x128xf32, #tpu.memory_space<vmem>>, %arg9: memref<64x128xbf16, #tpu.memory_space<vmem>>, %arg10: memref<64x1xf32, #tpu.memory_space<vmem>>, %arg11: memref<64x1xf32, #tpu.memory_space<vmem>>) attributes {dimension_semantics = [#tpu.dimension_semantics<parallel>, #tpu.dimension_semantics<arbitrary>, #tpu.dimension_semantics<arbitrary>], iteration_bounds = array<i64: 1, 2, 1>, scalar_prefetch = 0 : i64, scratch_operands = 3 : i64, tpu.core_type = #tpu.core_type<tc>, window_params = [{transform_indices = @transform_0, window_bounds = array<i64: 64, 128>}, {pipeline_mode = #tpu.pipeline_mode<synchronous>, transform_indices = @transform_1, window_bounds = array<i64: 128, 128>}, {pipeline_mode = #tpu.pipeline_mode<synchronous>, transform_indices = @transform_2, window_bounds = array<i64: 1, 128>}, {transform_indices = @transform_3, window_bounds = array<i64: 128, 128>}, {transform_indices = @transform_4, window_bounds = array<i64: 1, 128>}, {transform_indices = @transform_5, window_bounds = array<i64: 64, 128>}]} {
    %c0_i32 = arith.constant 0 : i32
    %0 = arith.cmpi eq, %arg1, %c0_i32 : i32
    %c0_i32_0 = arith.constant 0 : i32
    %1 = arith.cmpi eq, %arg2, %c0_i32_0 : i32
    %2 = arith.andi %0, %1 : i1
    %3 = arith.extui %2 : i1 to i32
    %c0_i32_1 = arith.constant 0 : i32
    %4 = arith.cmpi ne, %3, %c0_i32_1 : i32
    scf.if %4 {
      %c0_10 = arith.constant 0 : index
      %c0_11 = arith.constant 0 : index
      %17 = vector.load %arg3[%c0_10, %c0_11] : memref<64x128xbf16, #tpu.memory_space<vmem>>, vector<64x128xbf16>
      %c0_12 = arith.constant 0 : index
      %c0_13 = arith.constant 0 : index
      %18 = vector.load %arg4[%c0_12, %c0_13] : memref<128x128xbf16, #tpu.memory_space<vmem>>, vector<128x128xbf16>
      %cst_14 = arith.constant dense<0.000000e+00> : vector<64x128xf32>
      %19 = tpu.matmul %17, %18, %cst_14 {dimension_numbers = #tpu.dot_dimension_numbers<[1], [1], [0], [0], [0, 0, 1, 0], [], []>} : vector<64x128xbf16>, vector<128x128xbf16>, vector<64x128xf32> -> vector<64x128xf32>
      %c0_15 = arith.constant 0 : index
      %c0_16 = arith.constant 0 : index
      %20 = vector.load %arg5[%c0_15, %c0_16] : memref<1x128xf32, #tpu.memory_space<vmem>>, vector<1x128xf32>
      %21 = vector.broadcast %20 : vector<1x128xf32> to vector<64x128xf32>
      %22 = arith.addf %19, %21 : vector<64x128xf32>
      %23 = arith.truncf %22 : vector<64x128xf32> to vector<64x128xbf16>
      %c0_17 = arith.constant 0 : index
      %c0_18 = arith.constant 0 : index
      %24 = vector.load %arg9[%c0_17, %c0_18] : memref<64x128xbf16, #tpu.memory_space<vmem>>, vector<64x128xbf16>
      tpu.vector_store %arg9[%c0_17, %c0_18], %23 {strides = array<i32>} : memref<64x128xbf16, #tpu.memory_space<vmem>>, vector<64x128xbf16>,
      %cst_19 = arith.constant -1.000000e+30 : f32
      %25 = vector.broadcast %cst_19 : f32 to vector<64x1xf32>
      %c0_20 = arith.constant 0 : index
      %c0_21 = arith.constant 0 : index
      %26 = vector.load %arg10[%c0_20, %c0_21] : memref<64x1xf32, #tpu.memory_space<vmem>>, vector<64x1xf32>
      tpu.vector_store %arg10[%c0_20, %c0_21], %25 {strides = array<i32>} : memref<64x1xf32, #tpu.memory_space<vmem>>, vector<64x1xf32>,
      %cst_22 = arith.constant 0.000000e+00 : f32
      %27 = vector.broadcast %cst_22 : f32 to vector<64x1xf32>
      %c0_23 = arith.constant 0 : index
      %c0_24 = arith.constant 0 : index
      %28 = vector.load %arg11[%c0_23, %c0_24] : memref<64x1xf32, #tpu.memory_space<vmem>>, vector<64x1xf32>
      tpu.vector_store %arg11[%c0_23, %c0_24], %27 {strides = array<i32>} : memref<64x1xf32, #tpu.memory_space<vmem>>, vector<64x1xf32>,
    } else {
    }
    %c0 = arith.constant 0 : index
    %c0_2 = arith.constant 0 : index
    %5 = vector.load %arg9[%c0, %c0_2] : memref<64x128xbf16, #tpu.memory_space<vmem>>, vector<64x128xbf16>
    %c0_3 = arith.constant 0 : index
    %c0_4 = arith.constant 0 : index
    %6 = vector.load %arg6[%c0_3, %c0_4] : memref<128x128xbf16, #tpu.memory_space<vmem>>, vector<128x128xbf16>
    %cst = arith.constant dense<0.000000e+00> : vector<64x128xf32>
    %7 = tpu.matmul %5, %6, %cst {dimension_numbers = #tpu.dot_dimension_numbers<[1], [1], [0], [0], [0, 0, 1, 0], [], []>} : vector<64x128xbf16>, vector<128x128xbf16>, vector<64x128xf32> -> vector<64x128xf32>
    %c0_5 = arith.constant 0 : index
    %c0_6 = arith.constant 0 : index
    %8 = vector.load %arg7[%c0_5, %c0_6] : memref<1x128xf32, #tpu.memory_space<vmem>>, vector<1x128xf32>
    %9 = vector.broadcast %8 : vector<1x128xf32> to vector<64x128xf32>
    %10 = arith.addf %7, %9 : vector<64x128xf32>
    %c0_i32_7 = arith.constant 0 : i32
    %11 = arith.cmpi eq, %arg1, %c0_i32_7 : i32
    %12 = arith.extui %11 : i1 to i32
    %c0_i32_8 = arith.constant 0 : i32
    %13 = arith.cmpi ne, %12, %c0_i32_8 : i32
    scf.if %13 {
      %c0_10 = arith.constant 0 : index
      %c0_11 = arith.constant 0 : index
      %17 = vector.load %arg10[%c0_10, %c0_11] : memref<64x1xf32, #tpu.memory_space<vmem>>, vector<64x1xf32>
      %cst_12 = arith.constant dense<0xFF800000> : vector<64xf32>
      %18 = vector.multi_reduction <maximumf>, %10, %cst_12 [1] : vector<64x128xf32> to vector<64xf32>
      %19 = vector.shape_cast %18 : vector<64xf32> to vector<64x1xf32>
      %20 = arith.maximumf %17, %19 : vector<64x1xf32>
      %c0_13 = arith.constant 0 : index
      %c0_14 = arith.constant 0 : index
      %21 = vector.load %arg11[%c0_13, %c0_14] : memref<64x1xf32, #tpu.memory_space<vmem>>, vector<64x1xf32>
      %22 = arith.subf %17, %20 : vector<64x1xf32>
      %23 = math.exp %22 : vector<64x1xf32>
      %24 = arith.mulf %21, %23 : vector<64x1xf32>
      %25 = vector.broadcast %20 : vector<64x1xf32> to vector<64x128xf32>
      %26 = arith.subf %10, %25 : vector<64x128xf32>
      %27 = math.exp %26 : vector<64x128xf32>
      %cst_15 = arith.constant dense<0.000000e+00> : vector<64xf32>
      %28 = vector.multi_reduction <add>, %27, %cst_15 [1] : vector<64x128xf32> to vector<64xf32>
      %29 = vector.shape_cast %28 : vector<64xf32> to vector<64x1xf32>
      %30 = arith.addf %24, %29 : vector<64x1xf32>
      %c0_16 = arith.constant 0 : index
      %c0_17 = arith.constant 0 : index
      %31 = vector.load %arg11[%c0_16, %c0_17] : memref<64x1xf32, #tpu.memory_space<vmem>>, vector<64x1xf32>
      tpu.vector_store %arg11[%c0_16, %c0_17], %30 {strides = array<i32>} : memref<64x1xf32, #tpu.memory_space<vmem>>, vector<64x1xf32>,
      %c0_18 = arith.constant 0 : index
      %c0_19 = arith.constant 0 : index
      %32 = vector.load %arg10[%c0_18, %c0_19] : memref<64x1xf32, #tpu.memory_space<vmem>>, vector<64x1xf32>
      tpu.vector_store %arg10[%c0_18, %c0_19], %20 {strides = array<i32>} : memref<64x1xf32, #tpu.memory_space<vmem>>, vector<64x1xf32>,
    } else {
    }
    %c1_i32 = arith.constant 1 : i32
    %14 = arith.cmpi eq, %arg1, %c1_i32 : i32
    %15 = arith.extui %14 : i1 to i32
    %c0_i32_9 = arith.constant 0 : i32
    %16 = arith.cmpi ne, %15, %c0_i32_9 : i32
    scf.if %16 {
      %c0_10 = arith.constant 0 : index
      %c0_11 = arith.constant 0 : index
      %17 = vector.load %arg10[%c0_10, %c0_11] : memref<64x1xf32, #tpu.memory_space<vmem>>, vector<64x1xf32>
      %c0_12 = arith.constant 0 : index
      %c0_13 = arith.constant 0 : index
      %18 = vector.load %arg11[%c0_12, %c0_13] : memref<64x1xf32, #tpu.memory_space<vmem>>, vector<64x1xf32>
      %19 = math.log %18 : vector<64x1xf32>
      %20 = arith.addf %17, %19 : vector<64x1xf32>
      %21 = vector.broadcast %20 : vector<64x1xf32> to vector<64x128xf32>
      %22 = arith.subf %10, %21 : vector<64x128xf32>
      %c0_14 = arith.constant 0 : index
      %c0_15 = arith.constant 0 : index
      %23 = vector.load %arg8[%c0_14, %c0_15] : memref<64x128xf32, #tpu.memory_space<vmem>>, vector<64x128xf32>
      tpu.vector_store %arg8[%c0_14, %c0_15], %22 {strides = array<i32>} : memref<64x128xf32, #tpu.memory_space<vmem>>, vector<64x128xf32>,
    } else {
    }
    return
  }
  func.func @transform_0(%arg0: i32, %arg1: i32, %arg2: i32) -> (i32, i32) {
    %c0_i32 = arith.constant 0 : i32
    %c0_i32_0 = arith.constant 0 : i32
    return %arg0, %c0_i32 : i32, i32
  }
  func.func @transform_1(%arg0: i32, %arg1: i32, %arg2: i32) -> (i32, i32) {
    %c0_i32 = arith.constant 0 : i32
    %c0_i32_0 = arith.constant 0 : i32
    %c0_i32_1 = arith.constant 0 : i32
    return %c0_i32, %c0_i32_0 : i32, i32
  }
  func.func @transform_2(%arg0: i32, %arg1: i32, %arg2: i32) -> (i32, i32) {
    %c0_i32 = arith.constant 0 : i32
    %c0_i32_0 = arith.constant 0 : i32
    %c0_i32_1 = arith.constant 0 : i32
    return %c0_i32, %c0_i32_0 : i32, i32
  }
  func.func @transform_3(%arg0: i32, %arg1: i32, %arg2: i32) -> (i32, i32) {
    %c0_i32 = arith.constant 0 : i32
    %c0_i32_0 = arith.constant 0 : i32
    return %arg2, %c0_i32 : i32, i32
  }
  func.func @transform_4(%arg0: i32, %arg1: i32, %arg2: i32) -> (i32, i32) {
    %c0_i32 = arith.constant 0 : i32
    %c0_i32_0 = arith.constant 0 : i32
    return %c0_i32, %arg2 : i32, i32
  }
  func.func @transform_5(%arg0: i32, %arg1: i32, %arg2: i32) -> (i32, i32) {
    %0 = arith.muli %arg1, %arg2 : i32
    %c0_i32 = arith.constant 0 : i32
    return %arg0, %0 : i32, i32
  }
}

</mosaic_0001>

<bundles_post_ra>
// kernel: decoder_forward.3
= control target key start
LH: loop header
LB: loop body
LE: loop exit
PB: predicated region body
PF: predicated region fallthrough
CT: control target
= control target key end

     0   :  { %v73_v28 = vlaneseq  ;;  %s817_s1 = inlined_call_operand.vmem [shape: bf16[384,128], index: 1, kind: input, shape index: {}]   ;;  %s818_s0 = inlined_call_operand.vmem [shape: bf16[64,128], index: 0, kind: input, shape index: {}]   ;;  %s819_s2 = inlined_call_operand.vmem [shape: f32[1,384], index: 2, kind: input, shape index: {}]   ;;  %s820_s3 = inlined_call_operand.vmem [shape: bf16[64,384], index: 3, kind: output, shape index: {}]  }
   0x1   :  { %v614_v0 = vld [vmem:[%s817_s1 + $0x40] sm:$0xff]   ;;  %v616_v2 = vld [vmem:[%s817_s1 + $0x48] sm:$0xff]   ;;  %v619_v6 = vld [vmem:[%s817_s1 + $0x50] sm:$0xff]  }
   0x2   :  { %v615_v1 = vld [vmem:[%s817_s1] sm:$0xff]   ;;  %554 = vmatprep.subr.bf16.mxu0 %v614_v0  ;;  %v617_v4 = vld [vmem:[%s817_s1 + $0x8] sm:$0xff]   ;;  %v624_v7 = vld [vmem:[%s817_s1 + $0x90] sm:$0xff]   ;;  %v74_v29 = vshrl.u32 %v73_v28, 7 }
   0x3   :  { %555 = vmatpush3.bf16.xpose.msra.mxu0 %v615_v1  ;;  %v618_v3 = vld [vmem:[%s817_s1 + $0x80] sm:$0xff]   ;;  %v621_v5 = vld [vmem:[%s817_s1 + $0x88] sm:$0xff]   ;;  %v620_v8 = vld [vmem:[%s817_s1 + $0x10] sm:$0xff]  }
   0x4   :  { %556 = vmatprep.subr.bf16.mxu0 %v616_v2  ;;  %590 = vmatprep.subr.bf16.mxu1 %v618_v3  ;;  %v622_v9 = vld [vmem:[%s817_s1 + $0x58] sm:$0xff]   ;;  %v637_v12 = vld [vmem:[%s818_s0] sm:$0xff]   ;;  %v628_v16 = vld [vmem:[%s817_s1 + $0x68] sm:$0xff]   ;;  %v75_v30 = vsub.s32 0, %v74_v29  ;;  %v79_v32 = vsub.s32 1, %v74_v29  ;;  %v83_v34 = vsub.s32 2, %v74_v29 }
   0x5   :  { %591 = vmatpush3.bf16.xpose.msra.mxu1 %v618_v3  ;;  %v627_v10 = vld [vmem:[%s817_s1 + $0x98] sm:$0xff]   ;;  %v625_v13 = vld [vmem:[%s817_s1 + $0x60] sm:$0xff]   ;;  %570 = vmatprep.mubr.bf16.mxu0 %v637_v12  ;;  %v633_v17 = vld [vmem:[%s817_s1 + $0xa8] sm:$0xff]  }
   0x6   :  { %592 = vmatprep.subr.bf16.mxu1 %v621_v5  ;;  %v623_v11 = vld [vmem:[%s817_s1 + $0x18] sm:$0xff]   ;;  %606 = vmatprep.mubr.bf16.mxu1 %v637_v12  ;;  %v630_v14 = vld [vmem:[%s817_s1 + $0xa0] sm:$0xff]   ;;  %v629_v18 = vld [vmem:[%s817_s1 + $0x28] sm:$0xff]  }
   0x7   :  { %v626_v15 = vld [vmem:[%s817_s1 + $0x20] sm:$0xff]   ;;  %v631_v19 = vld [vmem:[%s817_s1 + $0x70] sm:$0xff]   ;;  %v634_v22 = vld [vmem:[%s817_s1 + $0x78] sm:$0xff]  }
   0x8   :  { %v636_v20 = vld [vmem:[%s817_s1 + $0xb0] sm:$0xff]   ;;  %v638_v23 = vld [vmem:[%s817_s1 + $0xb8] sm:$0xff]   ;;  %v639_v25 = vld [vmem:[%s818_s0 + $0x8] sm:$0xff]  }
   0x9   :  { %v632_v21 = vld [vmem:[%s817_s1 + $0x30] sm:$0xff]   ;;  %v635_v24 = vld [vmem:[%s817_s1 + $0x38] sm:$0xff]   ;;  %v71_v31 = vld [vmem:[%s819_s2] sm:$0x7] }
   0xa   :  { %v640_v26 = vld [vmem:[%s818_s0 + $0x10] sm:$0xff]   ;;  %v641_v27 = vld [vmem:[%s818_s0 + $0x18] sm:$0xff]   ;;  %v749_v33 = vrot.slane %v71_v31, %v75_v30  ;;  %v751_v35 = vrot.slane %v71_v31, %v79_v32  ;;  %v84_v39 = vrot.slane %v71_v31, %v83_v34 }
   0xb   :  { %557 = vmatpush3.bf16.xpose.msra.mxu0 %v617_v4 }
   0xc   :  { %558 = vmatprep.subr.bf16.mxu0 %v619_v6 }
   0xd   :  { %593 = vmatpush3.bf16.xpose.msra.mxu1 %v621_v5 }
   0xe   :  { %594 = vmatprep.subr.bf16.mxu1 %v624_v7 }
  0x13   :  { %559 = vmatpush3.bf16.xpose.msra.mxu0 %v620_v8 }
  0x14   :  { %560 = vmatprep.subr.bf16.mxu0 %v622_v9 }
  0x15   :  { %595 = vmatpush3.bf16.xpose.msra.mxu1 %v624_v7 }
  0x16   :  { %596 = vmatprep.subr.bf16.mxu1 %v627_v10 }
  0x1b   :  { %561 = vmatpush3.bf16.xpose.msra.mxu0 %v623_v11 }
  0x1c   :  { %562 = vmatprep.subr.bf16.mxu0 %v625_v13 }
  0x1d   :  { %597 = vmatpush3.bf16.xpose.msra.mxu1 %v627_v10 }
  0x1e   :  { %598 = vmatprep.subr.bf16.mxu1 %v630_v14 }
  0x23   :  { %563 = vmatpush3.bf16.xpose.msra.mxu0 %v626_v15 }
  0x24   :  { %564 = vmatprep.subr.bf16.mxu0 %v628_v16 }
  0x25   :  { %599 = vmatpush3.bf16.xpose.msra.mxu1 %v630_v14 }
  0x26   :  { %600 = vmatprep.subr.bf16.mxu1 %v633_v17 }
  0x2b   :  { %565 = vmatpush3.bf16.xpose.msra.mxu0 %v629_v18 }
  0x2c   :  { %566 = vmatprep.subr.bf16.mxu0 %v631_v19 }
  0x2d   :  { %601 = vmatpush3.bf16.xpose.msra.mxu1 %v633_v17 }
  0x2e   :  { %602 = vmatprep.subr.bf16.mxu1 %v636_v20 }
  0x33   :  { %567 = vmatpush3.bf16.xpose.msra.mxu0 %v632_v21 }
  0x34   :  { %568 = vmatprep.subr.bf16.mxu0 %v634_v22 }
  0x35   :  { %603 = vmatpush3.bf16.xpose.msra.mxu1 %v636_v20 }
  0x36   :  { %604 = vmatprep.subr.bf16.mxu1 %v638_v23 }
  0x3b   :  { %569 = vmatpush3.bf16.xpose.msra.mxu0 %v635_v24 }
  0x3d   :  { %605 = vmatpush3.bf16.xpose.msra.mxu1 %v638_v23 }
  0x42   :  { %571 = vmatmul.mubr.bf16.vlgmr.msra.gmra.mrb[0].mxu0 %v637_v12 }
  0x43   :  { %572 = vmatprep.mubr.bf16.mxu0 %v639_v25 }
  0x44   :  { %607 = vmatmul.mubr.bf16.vlgmr.msra.gmra.mrb[0].mxu1 %v639_v25 }
  0x45   :  { %610 = vmatprep.mubr.bf16.mxu1 %v640_v26 }
  0x4a   :  { %573 = vmatmul.mubr.bf16.gmra.mrb[4].mxu0 %v639_v25 }
  0x4b   :  { %574 = vmatprep.mubr.bf16.mxu0 %v640_v26 }
  0x4c   :  { %611 = vmatmul.mubr.bf16.gmra.mrb[4].mxu1 %v641_v27 }
  0x52   :  { %575 = vmatmul.mubr.bf16.gmra.mrb[8].mxu0 %v640_v26 }
  0x53   :  { %576 = vmatprep.mubr.bf16.mxu0 %v641_v27 }
  0x5a   :  { %577 = vmatmul.mubr.bf16.gmra.mrb[12].mxu0 %v641_v27 }
 0x115   :  { %v290_v36 = vpop.f32.mrb[0].mxu0 }
 0x116   :  { %v291_v37 = vadd.f32 %v290_v36, %v749_v33  ;;  %v292_v38 = vpop.f32.mrb[1].mxu0 }
 0x117   :  { %v293_v40 = vadd.f32 %v292_v38, %v751_v35  ;;  %v294_v41 = vpop.f32.mrb[2].mxu0  ;;  %v608_v46 = vpop.f32.mrb[0].mxu1 }
 0x118   :  { %v295_v42 = vadd.f32 %v294_v41, %v749_v33  ;;  %v296_v43 = vpop.f32.mrb[3].mxu0  ;;  %v372_v47 = vadd.f32 %v608_v46, %v84_v39  ;;  %v363_v48 = vpop.f32.mrb[1].mxu1 }
 0x119   :  { %v538_v44 = vpack.c.bf16 %v293_v40, %v291_v37  ;;  %v297_v45 = vadd.f32 %v296_v43, %v751_v35  ;;  %v364_v50 = vadd.f32 %v363_v48, %v84_v39  ;;  %v609_v51 = vpop.f32.mrb[2].mxu1 }
 0x11a   :  { %v543_v52 = vpack.c.bf16 %v372_v47, %v372_v47  ;;  %v375_v53 = vadd.f32 %v609_v51, %v84_v39  ;;  %v366_v54 = vpop.f32.mrb[3].mxu1 }
 0x11b   :  { %474 = vst [vmem:[%s820_s3] sm:$0xff] %v538_v44  ;;  %v540_v49 = vpack.c.bf16 %v297_v45, %v295_v42  ;;  %v539_v56 = vpack.c.bf16 %v364_v50, %v364_v50  ;;  %v367_v57 = vadd.f32 %v366_v54, %v84_v39 }
 0x11c   :  { %479 = vst [vmem:[%s820_s3 + $0x20] sm:$0xf] %v543_v52  ;;  %v545_v60 = vpack.c.bf16 %v375_v53, %v375_v53 }
 0x11d   :  { %476 = vst [vmem:[%s820_s3 + $0xc] sm:$0xff] %v540_v49  ;;  %v300_v55 = vpop.f32.mrb[4].mxu0  ;;  %475 = vst [vmem:[%s820_s3 + $0x8] sm:$0xf] %v539_v56  ;;  %v541_v63 = vpack.c.bf16 %v367_v57, %v367_v57 }
 0x11e   :  { %v301_v58 = vadd.f32 %v300_v55, %v749_v33  ;;  %v302_v59 = vpop.f32.mrb[5].mxu0  ;;  %481 = vst [vmem:[%s820_s3 + $0x2c] sm:$0xf] %v545_v60 }
 0x11f   :  { %v303_v61 = vadd.f32 %v302_v59, %v751_v35  ;;  %v304_v62 = vpop.f32.mrb[6].mxu0  ;;  %477 = vst [vmem:[%s820_s3 + $0x14] sm:$0xf] %v541_v63  ;;  %v612_v4 = vpop.f32.mrb[4].mxu1 }
 0x120   :  { %v305_v0 = vadd.f32 %v304_v62, %v749_v33  ;;  %v306_v1 = vpop.f32.mrb[7].mxu0  ;;  %v388_v5 = vadd.f32 %v612_v4, %v84_v39  ;;  %v379_v6 = vpop.f32.mrb[5].mxu1 }
 0x121   :  { %v542_v2 = vpack.c.bf16 %v303_v61, %v301_v58  ;;  %v307_v3 = vadd.f32 %v306_v1, %v751_v35  ;;  %v380_v8 = vadd.f32 %v379_v6, %v84_v39  ;;  %v613_v9 = vpop.f32.mrb[6].mxu1 }
 0x122   :  { %v551_v10 = vpack.c.bf16 %v388_v5, %v388_v5  ;;  %v391_v11 = vadd.f32 %v613_v9, %v84_v39  ;;  %v382_v12 = vpop.f32.mrb[7].mxu1 }
 0x123   :  { %478 = vst [vmem:[%s820_s3 + $0x18] sm:$0xff] %v542_v2  ;;  %v544_v7 = vpack.c.bf16 %v307_v3, %v305_v0  ;;  %v547_v14 = vpack.c.bf16 %v380_v8, %v380_v8  ;;  %v383_v15 = vadd.f32 %v382_v12, %v84_v39 }
 0x124   :  { %487 = vst [vmem:[%s820_s3 + $0x50] sm:$0xf] %v551_v10  ;;  %v553_v18 = vpack.c.bf16 %v391_v11, %v391_v11 }
 0x125   :  { %480 = vst [vmem:[%s820_s3 + $0x24] sm:$0xff] %v544_v7  ;;  %v310_v13 = vpop.f32.mrb[8].mxu0  ;;  %483 = vst [vmem:[%s820_s3 + $0x38] sm:$0xf] %v547_v14  ;;  %v549_v21 = vpack.c.bf16 %v383_v15, %v383_v15 }
 0x126   :  { %v311_v16 = vadd.f32 %v310_v13, %v749_v33  ;;  %v312_v17 = vpop.f32.mrb[9].mxu0  ;;  %489 = vst [vmem:[%s820_s3 + $0x5c] sm:$0xf] %v553_v18 }
 0x127   :  { %v313_v19 = vadd.f32 %v312_v17, %v751_v35  ;;  %v314_v20 = vpop.f32.mrb[10].mxu0  ;;  %485 = vst [vmem:[%s820_s3 + $0x44] sm:$0xf] %v549_v21 }
 0x128   :  { %v315_v22 = vadd.f32 %v314_v20, %v749_v33  ;;  %v316_v23 = vpop.f32.mrb[11].mxu0 }
 0x129   :  { %v546_v24 = vpack.c.bf16 %v313_v19, %v311_v16  ;;  %v317_v25 = vadd.f32 %v316_v23, %v751_v35 }
 0x12b   :  { %482 = vst [vmem:[%s820_s3 + $0x30] sm:$0xff] %v546_v24  ;;  %v548_v26 = vpack.c.bf16 %v317_v25, %v315_v22 }
 0x12d   :  { %484 = vst [vmem:[%s820_s3 + $0x3c] sm:$0xff] %v548_v26  ;;  %v320_v27 = vpop.f32.mrb[12].mxu0 }
 0x12e   :  { %v321_v28 = vadd.f32 %v320_v27, %v749_v33  ;;  %v322_v29 = vpop.f32.mrb[13].mxu0 }
 0x12f   :  { %v323_v30 = vadd.f32 %v322_v29, %v751_v35  ;;  %v324_v31 = vpop.f32.mrb[14].mxu0 }
 0x130   :  { %v325_v32 = vadd.f32 %v324_v31, %v749_v33  ;;  %v326_v34 = vpop.f32.mrb[15].mxu0 }
 0x131   :  { %v550_v36 = vpack.c.bf16 %v323_v30, %v321_v28  ;;  %v327_v37 = vadd.f32 %v326_v34, %v751_v35 }
 0x133   :  { %486 = vst [vmem:[%s820_s3 + $0x48] sm:$0xff] %v550_v36  ;;  %v552_v38 = vpack.c.bf16 %v327_v37, %v325_v32 }
 0x135   :  { %488 = vst [vmem:[%s820_s3 + $0x54] sm:$0xff] %v552_v38 }

// kernel: decoder_forward.5
= control target key start
LH: loop header
LB: loop body
LE: loop exit
PB: predicated region body
PF: predicated region fallthrough
CT: control target
= control target key end

     0   :  { %s1326_s18 = smov 0   ;;  %s1328_s19 = smov 0   ;;  %s1616_s0 = inlined_call_operand.vmem [shape: bf16[64,128], index: 0, kind: input, shape index: {}]   ;;  %s1617_s1 = inlined_call_operand.vmem [shape: bf16[128,128], index: 1, kind: input, shape index: {}]   ;;  %s1618_s2 = inlined_call_operand.vmem [shape: f32[1,128], index: 2, kind: input, shape index: {}]   ;;  %s1619_s3 = inlined_call_operand.vmem [shape: bf16[128,128], index: 3, kind: input, shape index: {}]   ;;  %s1620_s4 = inlined_call_operand.vmem [shape: f32[1,128], index: 4, kind: input, shape index: {}]   ;;  %s1621_s5 = inlined_call_operand.vmem [shape: f32[64,128], index: 5, kind: output, shape index: {}]  }
   0x1   :  { %s1330_s20 = smov 0  }
   0x2 LB: > { %s30_s21 = sadd.s32 1, %s1286_s19  ;;  %p1033_p0 = scmp.ge.s32.totalorder %s1290_s20, 1  ;;  %s1290_s20 = sphi %s1330_s20, %s15_s20   ;;  %s1286_s19 = sphi %s1328_s19, %s1623_s19   ;;  %s1282_s18 = sphi %s1326_s18, %s1622_s18  }
   0x3   : > { %p32_p1 = scmp.ge.s32.totalorder %s30_s21, 2  ;;  %p230_p2 = scmp.lt.s32.totalorder %s1290_s20, 3 }
   0x5   : > { %s1625_s21 = smov (%p32_p1, %s30_s21), 0  ;;  %p231_p3 = pnand %p1033_p0, %p230_p2 }
   0x6   : > { %p297_p4 = scmp.eq.s32.totalorder (!%p231_p3), %s1282_s18, 0 }
   0x7   : > { %234 = sbr.rel (%p231_p3) target bundleno = 1200 (0x4b0), region = 40 }
   0xe   : > { %302 = sbr.rel (!%p297_p4) target bundleno = 299 (0x12b), region = 44  ;;  %v1196_v0 = vld [vmem:[%s1617_s1] sm:$0xff] (%p297_p4)   ;;  %v1197_v1 = vld [vmem:[%s1617_s1 + $0x8] sm:$0xff] (%p297_p4)   ;;  %v1198_v2 = vld [vmem:[%s1617_s1 + $0x10] sm:$0xff] (%p297_p4)   ;;  %vm479_vm0 = vcmask (%p297_p4), 7168   ;;  %v1293_v13 = vmov (%p297_p4), 0.0  }
   0xf   : > { %1088 = vmatprep.subr.bf16.mxu0 (%p297_p4), %v1196_v0  ;;  %1136 = vmatprep.subr.bf16.mxu1 (%p297_p4), %v1196_v0  ;;  %v1204_v3 = vld [vmem:[%s1616_s0] sm:$0xff] (%p297_p4)   ;;  %v1205_v4 = vld [vmem:[%s1616_s0 + $0x10] sm:$0xff] (%p297_p4)   ;;  %v1199_v5 = vld [vmem:[%s1617_s1 + $0x18] sm:$0xff] (%p297_p4)   ;;  %v1292_v12 = vmov (%p297_p4), -1e+30   ;;  %488 = vst.msk [vmem:[#allocation4] sm:$0xff] (%p297_p4), %vm479_vm0, %v1293_v13 }
  0x10   : > { %1089 = vmatpush3.bf16.xpose.msra.mxu0 (%p297_p4), %v1196_v0  ;;  %1144 = vmatpush3.bf16.xpose.msra.mxu1 (%p297_p4), %v1196_v0  ;;  %v1200_v6 = vld [vmem:[%s1617_s1 + $0x20] sm:$0xff] (%p297_p4)   ;;  %v1201_v7 = vld [vmem:[%s1617_s1 + $0x28] sm:$0xff] (%p297_p4)   ;;  %v1202_v8 = vld [vmem:[%s1617_s1 + $0x30] sm:$0xff] (%p297_p4)   ;;  %480 = vst.msk [vmem:[#allocation3] sm:$0xff] (%p297_p4), %vm479_vm0, %v1292_v12 }
  0x11   : > { %1090 = vmatprep.subr.bf16.mxu0 (%p297_p4), %v1197_v1  ;;  %1137 = vmatprep.subr.bf16.mxu1 (%p297_p4), %v1197_v1  ;;  %v1203_v9 = vld [vmem:[%s1617_s1 + $0x38] sm:$0xff] (%p297_p4)   ;;  %v1206_v10 = vld [vmem:[%s1616_s0 + $0x8] sm:$0xff] (%p297_p4)   ;;  %481 = vst.msk [vmem:[#allocation3 + $0x8] sm:$0xff] (%p297_p4), %vm479_vm0, %v1292_v12  ;;  %482 = vst.msk [vmem:[#allocation3 + $0x10] sm:$0xff] (%p297_p4), %vm479_vm0, %v1292_v12 }
  0x12   : > { %1104 = vmatprep.mubr.bf16.mxu0 (%p297_p4), %v1204_v3  ;;  %1108 = vmatprep.mubr.bf16.mxu1 (%p297_p4), %v1205_v4  ;;  %v1207_v11 = vld [vmem:[%s1616_s0 + $0x18] sm:$0xff] (%p297_p4)   ;;  %483 = vst.msk [vmem:[#allocation3 + $0x18] sm:$0xff] (%p297_p4), %vm479_vm0, %v1292_v12  ;;  %484 = vst.msk [vmem:[#allocation3 + $0x20] sm:$0xff] (%p297_p4), %vm479_vm0, %v1292_v12  ;;  %v1035_v15 = vld [vmem:[%s1618_s2] ss:$0 sm:$0xff] (%p297_p4) }
  0x13   : > { %485 = vst.msk [vmem:[#allocation3 + $0x28] sm:$0xff] (%p297_p4), %vm479_vm0, %v1292_v12  ;;  %486 = vst.msk [vmem:[#allocation3 + $0x30] sm:$0xff] (%p297_p4), %vm479_vm0, %v1292_v12 }
  0x14   : > { %487 = vst.msk [vmem:[#allocation3 + $0x38] sm:$0xff] (%p297_p4), %vm479_vm0, %v1292_v12  ;;  %489 = vst.msk [vmem:[#allocation4 + $0x8] sm:$0xff] (%p297_p4), %vm479_vm0, %v1293_v13 }
  0x15   : > { %490 = vst.msk [vmem:[#allocation4 + $0x10] sm:$0xff] %vm479_vm0, %v1293_v13  ;;  %491 = vst.msk [vmem:[#allocation4 + $0x18] sm:$0xff] %vm479_vm0, %v1293_v13 }
  0x16   : > { %492 = vst.msk [vmem:[#allocation4 + $0x20] sm:$0xff] %vm479_vm0, %v1293_v13  ;;  %493 = vst.msk [vmem:[#allocation4 + $0x28] sm:$0xff] %vm479_vm0, %v1293_v13 }
  0x17   : > { %494 = vst.msk [vmem:[#allocation4 + $0x30] sm:$0xff] %vm479_vm0, %v1293_v13  ;;  %495 = vst.msk [vmem:[#allocation4 + $0x38] sm:$0xff] %vm479_vm0, %v1293_v13 }
  0x18   : > { %1091 = vmatpush3.bf16.xpose.msra.mxu0 %v1197_v1  ;;  %1145 = vmatpush3.bf16.xpose.msra.mxu1 %v1197_v1 }
  0x19   : > { %1092 = vmatprep.subr.bf16.mxu0 %v1198_v2  ;;  %1138 = vmatprep.subr.bf16.mxu1 %v1198_v2 }
  0x20   : > { %1093 = vmatpush3.bf16.xpose.msra.mxu0 %v1198_v2  ;;  %1146 = vmatpush3.bf16.xpose.msra.mxu1 %v1198_v2 }
  0x21   : > { %1094 = vmatprep.subr.bf16.mxu0 %v1199_v5  ;;  %1139 = vmatprep.subr.bf16.mxu1 %v1199_v5 }
  0x28   : > { %1095 = vmatpush3.bf16.xpose.msra.mxu0 %v1199_v5  ;;  %1147 = vmatpush3.bf16.xpose.msra.mxu1 %v1199_v5 }
  0x29   : > { %1096 = vmatprep.subr.bf16.mxu0 %v1200_v6  ;;  %1140 = vmatprep.subr.bf16.mxu1 %v1200_v6 }
  0x30   : > { %1097 = vmatpush3.bf16.xpose.msra.mxu0 %v1200_v6  ;;  %1148 = vmatpush3.bf16.xpose.msra.mxu1 %v1200_v6 }
  0x31   : > { %1098 = vmatprep.subr.bf16.mxu0 %v1201_v7  ;;  %1141 = vmatprep.subr.bf16.mxu1 %v1201_v7 }
  0x38   : > { %1099 = vmatpush3.bf16.xpose.msra.mxu0 %v1201_v7  ;;  %1149 = vmatpush3.bf16.xpose.msra.mxu1 %v1201_v7 }
  0x39   : > { %1100 = vmatprep.subr.bf16.mxu0 %v1202_v8  ;;  %1142 = vmatprep.subr.bf16.mxu1 %v1202_v8 }
  0x40   : > { %1101 = vmatpush3.bf16.xpose.msra.mxu0 %v1202_v8  ;;  %1150 = vmatpush3.bf16.xpose.msra.mxu1 %v1202_v8 }
  0x41   : > { %1102 = vmatprep.subr.bf16.mxu0 %v1203_v9  ;;  %1143 = vmatprep.subr.bf16.mxu1 %v1203_v9 }
  0x48   : > { %1103 = vmatpush3.bf16.xpose.msra.mxu0 %v1203_v9  ;;  %1151 = vmatpush3.bf16.xpose.msra.mxu1 %v1203_v9 }
  0x4f   : > { %1105 = vmatmul.mubr.bf16.vlgmr.msra.gmra.mrb[0].mxu0 %v1206_v10  ;;  %1109 = vmatmul.mubr.bf16.vlgmr.msra.gmra.mrb[0].mxu1 %v1207_v11 }
 0x122   : > { %v1106_v14 = vpop.f32.mrb[0].mxu0  ;;  %v1110_v16 = vpop.f32.mrb[0].mxu1 }
 0x123   : > { %v440_v17 = vpop.f32.mrb[1].mxu0  ;;  %v456_v18 = vpop.f32.mrb[1].mxu1  ;;  %v449_v21 = vadd.f32 %v1106_v14, %v1035_v15  ;;  %v465_v22 = vadd.f32 %v1110_v16, %v1035_v15 }
 0x124   : > { %v1107_v19 = vpop.f32.mrb[2].mxu0  ;;  %v1111_v20 = vpop.f32.mrb[2].mxu1  ;;  %v441_v27 = vadd.f32 %v1035_v15, %v440_v17  ;;  %v457_v28 = vadd.f32 %v1035_v15, %v456_v18 }
 0x125   : > { %v452_v23 = vadd.f32 %v1107_v19, %v1035_v15  ;;  %v468_v24 = vadd.f32 %v1111_v20, %v1035_v15  ;;  %v443_v25 = vpop.f32.mrb[3].mxu0  ;;  %v459_v26 = vpop.f32.mrb[3].mxu1 }
 0x126   : > { %v444_v29 = vadd.f32 %v1035_v15, %v443_v25  ;;  %v460_v30 = vadd.f32 %v1035_v15, %v459_v26 }
 0x127   : > { %v472_v31 = vpack.c.bf16 %v452_v23, %v449_v21  ;;  %v474_v32 = vpack.c.bf16 %v468_v24, %v465_v22 }
 0x128   : > { %v471_v33 = vpack.c.bf16 %v444_v29, %v441_v27  ;;  %v473_v34 = vpack.c.bf16 %v460_v30, %v457_v28 }
 0x129   : > { %476 = vst [vmem:[#allocation2 + $0x8] sm:$0xff] %v472_v31  ;;  %478 = vst [vmem:[#allocation2 + $0x18] sm:$0xff] %v474_v32 }
 0x12a   : > { %475 = vst [vmem:[#allocation2] sm:$0xff] %v471_v33  ;;  %477 = vst [vmem:[#allocation2 + $0x10] sm:$0xff] %v473_v34 }
 0x12b PF: > { %v1208_v35 = vld [vmem:[%s1619_s3] sm:$0xff]   ;;  %v1209_v36 = vld [vmem:[%s1619_s3 + $0x8] sm:$0xff]   ;;  %v1210_v37 = vld [vmem:[%s1619_s3 + $0x10] sm:$0xff]   ;;  %p1057_p5 = scmp.ne.s32.totalorder %s1282_s18, 0 }
 0x12c   : > { %1112 = vmatprep.subr.bf16.mxu0 %v1208_v35  ;;  %1152 = vmatprep.subr.bf16.mxu1 %v1208_v35  ;;  %v1211_v40 = vld [vmem:[%s1619_s3 + $0x18] sm:$0xff]   ;;  %v1212_v41 = vld [vmem:[%s1619_s3 + $0x20] sm:$0xff]   ;;  %v1213_v42 = vld [vmem:[%s1619_s3 + $0x28] sm:$0xff]   ;;  %v1294_v0 = vmov (!%p1057_p5), 0   ;;  %vm799_vm1 = vcmask (!%p1057_p5), 7168  }
 0x12d   : > { %1113 = vmatpush3.bf16.xpose.msra.mxu0 %v1208_v35  ;;  %1160 = vmatpush3.bf16.xpose.msra.mxu1 %v1208_v35  ;;  %v1214_v43 = vld [vmem:[%s1619_s3 + $0x30] sm:$0xff]   ;;  %v1215_v44 = vld [vmem:[%s1619_s3 + $0x38] sm:$0xff]   ;;  %v1048_v47 = vld [vmem:[%s1620_s4] ss:$0 sm:$0xff] }
 0x12e   : > { %1114 = vmatprep.subr.bf16.mxu0 %v1209_v36  ;;  %1153 = vmatprep.subr.bf16.mxu1 %v1209_v36  ;;  %v1454_v1 = vld [vmem:[#allocation3] sm:$0xff] (!%p1057_p5)  ;;  %v1456_v2 = vld [vmem:[#allocation3 + $0x10] sm:$0xff] (!%p1057_p5)  ;;  %v1464_v7 = vld [vmem:[#allocation3 + $0x8] sm:$0xff] (!%p1057_p5) }
 0x12f   : > { %1216 = vset.pattern.permute.xlu0 (!%p1057_p5), %v1294_v0  ;;  %1217 = vset.pattern.permute.xlu1 (!%p1057_p5), %v1294_v0  ;;  %v1466_v8 = vld [vmem:[#allocation3 + $0x18] sm:$0xff] (!%p1057_p5)  ;;  %v1483_v15 = vld [vmem:[#allocation3 + $0x20] sm:$0xff] (!%p1057_p5) }
 0x130   : > { %v497_v45 = vld [vmem:[#allocation2 + $0x8] sm:$0xff]  ;;  %v499_v46 = vld [vmem:[#allocation2 + $0x18] sm:$0xff]  ;;  %v1502_v23 = vld [vmem:[#allocation3 + $0x30] sm:$0xff] (!%p1057_p5) }
 0x131   : > { %v496_v38 = vld [vmem:[#allocation2] sm:$0xff]  ;;  %v498_v39 = vld [vmem:[#allocation2 + $0x10] sm:$0xff]  ;;  %v1485_v16 = vld [vmem:[#allocation3 + $0x28] sm:$0xff] (!%p1057_p5) }
 0x132   : > { %1128 = vmatprep.mubr.bf16.mxu0 %v496_v38  ;;  %1132 = vmatprep.mubr.bf16.mxu1 %v498_v39  ;;  %v1504_v24 = vld [vmem:[#allocation3 + $0x38] sm:$0xff] (!%p1057_p5) }
 0x135   : > { %1115 = vmatpush3.bf16.xpose.msra.mxu0 %v1209_v36  ;;  %1161 = vmatpush3.bf16.xpose.msra.mxu1 %v1209_v36 }
 0x136   : > { %1116 = vmatprep.subr.bf16.mxu0 %v1210_v37  ;;  %1154 = vmatprep.subr.bf16.mxu1 %v1210_v37 }
 0x13d   : > { %1117 = vmatpush3.bf16.xpose.msra.mxu0 %v1210_v37  ;;  %1162 = vmatpush3.bf16.xpose.msra.mxu1 %v1210_v37 }
 0x13e   : > { %1118 = vmatprep.subr.bf16.mxu0 %v1211_v40  ;;  %1155 = vmatprep.subr.bf16.mxu1 %v1211_v40 }
 0x145   : > { %1119 = vmatpush3.bf16.xpose.msra.mxu0 %v1211_v40  ;;  %1163 = vmatpush3.bf16.xpose.msra.mxu1 %v1211_v40 }
 0x146   : > { %1120 = vmatprep.subr.bf16.mxu0 %v1212_v41  ;;  %1156 = vmatprep.subr.bf16.mxu1 %v1212_v41 }
 0x14d   : > { %1121 = vmatpush3.bf16.xpose.msra.mxu0 %v1212_v41  ;;  %1164 = vmatpush3.bf16.xpose.msra.mxu1 %v1212_v41 }
 0x14e   : > { %1122 = vmatprep.subr.bf16.mxu0 %v1213_v42  ;;  %1157 = vmatprep.subr.bf16.mxu1 %v1213_v42 }
 0x155   : > { %1123 = vmatpush3.bf16.xpose.msra.mxu0 %v1213_v42  ;;  %1165 = vmatpush3.bf16.xpose.msra.mxu1 %v1213_v42 }
 0x156   : > { %1124 = vmatprep.subr.bf16.mxu0 %v1214_v43  ;;  %1158 = vmatprep.subr.bf16.mxu1 %v1214_v43 }
 0x15d   : > { %1125 = vmatpush3.bf16.xpose.msra.mxu0 %v1214_v43  ;;  %1166 = vmatpush3.bf16.xpose.msra.mxu1 %v1214_v43 }
 0x15e   : > { %1126 = vmatprep.subr.bf16.mxu0 %v1215_v44  ;;  %1159 = vmatprep.subr.bf16.mxu1 %v1215_v44 }
 0x165   : > { %1127 = vmatpush3.bf16.xpose.msra.mxu0 %v1215_v44  ;;  %1167 = vmatpush3.bf16.xpose.msra.mxu1 %v1215_v44 }
 0x16c   : > { %1129 = vmatmul.mubr.bf16.vlgmr.msra.gmra.mrb[0].mxu0 %v497_v45  ;;  %1133 = vmatmul.mubr.bf16.vlgmr.msra.gmra.mrb[0].mxu1 %v499_v46 }
 0x23d   : > { %638 = sbr.rel (%p1057_p5) target bundleno = 1039 (0x40f), region = 48 }
 0x23f   : > { %v1130_v48 = vpop.f32.mrb[0].mxu0  ;;  %v1134_v49 = vpop.f32.mrb[0].mxu1 }
 0x240   : > { %v1429_v50 = vadd.f32 %v1130_v48, %v1048_v47  ;;  %v1431_v51 = vadd.f32 %v1134_v49, %v1048_v47  ;;  %v605_v52 = vpop.f32.mrb[1].mxu0  ;;  %v621_v53 = vpop.f32.mrb[1].mxu1 }
 0x241   : > { %v1433_v54 = vadd.f32 %v1048_v47, %v605_v52  ;;  %v1435_v55 = vadd.f32 %v1048_v47, %v621_v53  ;;  %v1131_v56 = vpop.f32.mrb[2].mxu0  ;;  %v1135_v57 = vpop.f32.mrb[2].mxu1 }
 0x242   : > { %v1437_v58 = vadd.f32 %v1131_v56, %v1048_v47  ;;  %v1439_v59 = vadd.f32 %v1135_v57, %v1048_v47  ;;  %v608_v60 = vpop.f32.mrb[3].mxu0  ;;  %v624_v61 = vpop.f32.mrb[3].mxu1  ;;  %651 = vmax.xlane.f32.xlu1 (!%p1057_p5), %v1429_v50 }
 0x243   : > { %v1441_v62 = vadd.f32 %v1048_v47, %v608_v60  ;;  %v1443_v63 = vadd.f32 %v1048_v47, %v624_v61  ;;  %647 = vmax.xlane.f32.xlu0 (!%p1057_p5), %v1433_v54 }
 0x246   : > { %653 = vmax.xlane.f32.xlu1 %v1437_v58 }
 0x247   : > { %649 = vmax.xlane.f32.xlu0 %v1441_v62 }
 0x24a   : > { %657 = vmax.xlane.f32.xlu1 %v1443_v63 }
 0x24b   : > { %655 = vmax.xlane.f32.xlu0 %v1435_v55 }
 0x24e   : > { %661 = vmax.xlane.f32.xlu1 %v1439_v59 }
 0x24f   : > { %659 = vmax.xlane.f32.xlu0 %v1431_v51 }
 0x2cf   : > { %v652_v4 = vpop.xlane.xlu1 %651 }
 0x2d0   : > { %v648_v3 = vpop.xlane.xlu0 %647  ;;  %v1462_v6 = vmax.f32 %v1456_v2, %v652_v4 }
 0x2d1   : > { %v1459_v5 = vmax.f32 %v1454_v1, %v648_v3 }
 0x2d2   : > { %v681_v10 = vsub.f32 %v1456_v2, %v1462_v6  ;;  %810 = vst.msk [vmem:[#allocation3 + $0x10] sm:$0xff] %vm799_vm1, %v1462_v6 }
 0x2d3   : > { %v679_v9 = vsub.f32 %v1454_v1, %v1459_v5  ;;  %808 = vst.msk [vmem:[#allocation3] sm:$0xff] %vm799_vm1, %v1459_v5  ;;  %713 = vperm.xlu0 %1216, %v1459_v5   ;;  %v654_v12 = vpop.xlane.xlu1 %653 }
 0x2d4   : > { %v650_v11 = vpop.xlane.xlu0 %649  ;;  %v1481_v14 = vmax.f32 %v1466_v8, %v654_v12 }
 0x2d5   : > { %v1478_v13 = vmax.f32 %v1464_v7, %v650_v11 }
 0x2d6   : > { %v682_v18 = vsub.f32 %v1466_v8, %v1481_v14  ;;  %811 = vst.msk [vmem:[#allocation3 + $0x18] sm:$0xff] %vm799_vm1, %v1481_v14 }
 0x2d7   : > { %v680_v17 = vsub.f32 %v1464_v7, %v1478_v13  ;;  %809 = vst.msk [vmem:[#allocation3 + $0x8] sm:$0xff] %vm799_vm1, %v1478_v13  ;;  %718 = vperm.xlu1 %1217, %v1478_v13   ;;  %v658_v20 = vpop.xlane.xlu1 %657  ;;  %v672_v13 = vld [vmem:[#allocation4 + $0x8] sm:$0xff] }
 0x2d8   : > { %v656_v19 = vpop.xlane.xlu0 %655  ;;  %v1500_v22 = vmax.f32 %v1485_v16, %v658_v20 }
 0x2d9   : > { %v1497_v21 = vmax.f32 %v1483_v15, %v656_v19 }
 0x2da   : > { %v684_v26 = vsub.f32 %v1485_v16, %v1500_v22  ;;  %813 = vst.msk [vmem:[#allocation3 + $0x28] sm:$0xff] %vm799_vm1, %v1500_v22 }
 0x2db   : > { %723 = vperm.xlu1 %1217, %v1462_v6   ;;  %v683_v25 = vsub.f32 %v1483_v15, %v1497_v21  ;;  %812 = vst.msk [vmem:[#allocation3 + $0x20] sm:$0xff] %vm799_vm1, %v1497_v21  ;;  %v662_v28 = vpop.xlane.xlu1 %661 }
 0x2dc   : > { %v660_v27 = vpop.xlane.xlu0 %659  ;;  %v1519_v30 = vmax.f32 %v1504_v24, %v662_v28  ;;  %v697_v2 = vmul.f32 1.442695, %v684_v26 }
 0x2dd   : > { %v1516_v29 = vmax.f32 %v1502_v23, %v660_v27  ;;  %v695_v1 = vmul.f32 1.442695, %v683_v25 }
 0x2de   : > { %v686_v32 = vsub.f32 %v1504_v24, %v1519_v30  ;;  %815 = vst.msk [vmem:[#allocation3 + $0x38] sm:$0xff] %vm799_vm1, %v1519_v30 }
 0x2df   : > { %728 = vperm.xlu1 %1217, %v1481_v14   ;;  %v685_v31 = vsub.f32 %v1502_v23, %v1516_v29  ;;  %814 = vst.msk [vmem:[#allocation3 + $0x30] sm:$0xff] %vm799_vm1, %v1516_v29  ;;  %v673_v14 = vld [vmem:[#allocation4 + $0x10] sm:$0xff] }
 0x2e1   : > { %v699_v15 = vmul.f32 1.442695, %v685_v31 }
 0x2e3   : > { %733 = vperm.xlu1 %1217, %v1497_v21  }
 0x2e7   : > { %738 = vperm.xlu1 %1217, %v1500_v22   ;;  %v701_v22 = vmul.f32 1.442695, %v686_v32  ;;  %v677_v32 = vld [vmem:[#allocation4 + $0x30] sm:$0xff] }
 0x2eb   : > { %743 = vperm.xlu1 %1217, %v1516_v29  }
 0x2ef   : > { %748 = vperm.xlu1 %1217, %v1519_v30  }
 0x352   : > { %v714_v33 = vpop.permute.xlu0 %713 }
 0x353   : > { %v751_v34 = vsub.f32 %v1433_v54, %v714_v33  ;;  %v687_v33 = vmul.f32 1.442695, %v679_v9 }
 0x355   : > { %v759_v35 = vmul.f32 1.442695, %v751_v34  ;;  %v689_v34 = vmul.f32 1.442695, %v680_v17 }
 0x356   : > { %v719_v36 = vpop.permute.xlu1 %718 }
 0x357   : > { %1218 = vpow2.f32 %v759_v35  ;;  %v752_v37 = vsub.f32 %v1441_v62, %v719_v36  ;;  %v691_v35 = vmul.f32 1.442695, %v681_v10  ;;  %v693_v36 = vmul.f32 1.442695, %v682_v18 }
 0x359   : > { %v761_v38 = vmul.f32 1.442695, %v752_v37 }
 0x35a   : > { %v724_v39 = vpop.permute.xlu1 %723 }
 0x35b   : > { %1220 = vpow2.f32 %v761_v38  ;;  %v753_v40 = vsub.f32 %v1429_v50, %v724_v39  ;;  %v671_v38 = vld [vmem:[#allocation4] sm:$0xff] }
 0x35d   : > { %v763_v41 = vmul.f32 1.442695, %v753_v40  ;;  %v674_v40 = vld [vmem:[#allocation4 + $0x18] sm:$0xff] }
 0x35e   : > { %v729_v42 = vpop.permute.xlu1 %728 }
 0x35f   : > { %1222 = vpow2.f32 %v763_v41  ;;  %v754_v43 = vsub.f32 %v1437_v58, %v729_v42 }
 0x361   : > { %v1219_v44 = vpop.eup %1218  ;;  %v765_v45 = vmul.f32 1.442695, %v754_v43  ;;  %v675_v43 = vld [vmem:[#allocation4 + $0x20] sm:$0xff] }
 0x362   : > { %v734_v46 = vpop.permute.xlu1 %733  ;;  %775 = vadd.xlane.f32.xlu1 %v1219_v44 }
 0x363   : > { %1224 = vpow2.f32 %v765_v45  ;;  %v755_v47 = vsub.f32 %v1435_v55, %v734_v46  ;;  %v676_v45 = vld [vmem:[#allocation4 + $0x28] sm:$0xff] }
 0x365   : > { %v1221_v48 = vpop.eup %1220  ;;  %v767_v49 = vmul.f32 1.442695, %v755_v47 }
 0x366   : > { %v739_v52 = vpop.permute.xlu1 %738  ;;  %777 = vadd.xlane.f32.xlu0 %v1221_v48 }
 0x367   : > { %1226 = vpow2.f32 %v767_v49  ;;  %v756_v53 = vsub.f32 %v1443_v63, %v739_v52 }
 0x369   : > { %v1223_v56 = vpop.eup %1222  ;;  %v769_v57 = vmul.f32 1.442695, %v756_v53 }
 0x36a   : > { %v744_v60 = vpop.permute.xlu1 %743  ;;  %779 = vadd.xlane.f32.xlu0 %v1223_v56  ;;  %v678_v56 = vld [vmem:[#allocation4 + $0x38] sm:$0xff] }
 0x36b   : > { %1228 = vpow2.f32 %v769_v57  ;;  %v757_v61 = vsub.f32 %v1431_v51, %v744_v60 }
 0x36d   : > { %v1225_v0 = vpop.eup %1224  ;;  %v771_v3 = vmul.f32 1.442695, %v757_v61 }
 0x36e   : > { %v749_v4 = vpop.permute.xlu1 %748  ;;  %781 = vadd.xlane.f32.xlu1 %v1225_v0 }
 0x36f   : > { %1230 = vpow2.f32 %v771_v3  ;;  %v758_v11 = vsub.f32 %v1439_v59, %v749_v4 }
 0x371   : > { %v1227_v12 = vpop.eup %1226  ;;  %v773_v19 = vmul.f32 1.442695, %v758_v11 }
 0x372   : > { %783 = vadd.xlane.f32.xlu0 %v1227_v12 }
 0x373   : > { %1232 = vpow2.f32 %v773_v19 }
 0x374   : > { %1234 = vpow2.f32 %v687_v33 }
 0x375   : > { %v1229_v20 = vpop.eup %1228  ;;  %1236 = vpow2.f32 %v689_v34 }
 0x376   : > { %785 = vadd.xlane.f32.xlu1 %v1229_v20  ;;  %1238 = vpow2.f32 %v691_v35 }
 0x377   : > { %1240 = vpow2.f32 %v693_v36 }
 0x378   : > { %1242 = vpow2.f32 %v695_v1 }
 0x379   : > { %v1231_v27 = vpop.eup %1230  ;;  %1244 = vpow2.f32 %v697_v2 }
 0x37a   : > { %787 = vadd.xlane.f32.xlu0 %v1231_v27  ;;  %1246 = vpow2.f32 %v699_v15 }
 0x37b   : > { %1248 = vpow2.f32 %v701_v22 }
 0x37d   : > { %v1233_v28 = vpop.eup %1232 }
 0x37e   : > { %789 = vadd.xlane.f32.xlu1 %v1233_v28  ;;  %v1235_v37 = vpop.eup %1234 }
 0x37f   : > { %v703_v5 = vmul.f32 %v1235_v37, %v671_v38  ;;  %v1237_v7 = vpop.eup %1236 }
 0x380   : > { %v704_v6 = vmul.f32 %v1237_v7, %v672_v13  ;;  %v1239_v8 = vpop.eup %1238 }
 0x381   : > { %v705_v21 = vmul.f32 %v1239_v8, %v673_v14  ;;  %v1241_v25 = vpop.eup %1240 }
 0x382   : > { %v706_v26 = vmul.f32 %v1241_v25, %v674_v40  ;;  %v1243_v41 = vpop.eup %1242 }
 0x383   : > { %v707_v29 = vmul.f32 %v1243_v41, %v675_v43  ;;  %v1245_v31 = vpop.eup %1244 }
 0x384   : > { %v708_v47 = vmul.f32 %v1245_v31, %v676_v45  ;;  %v1247_v24 = vpop.eup %1246 }
 0x385   : > { %v709_v49 = vmul.f32 %v1247_v24, %v677_v32  ;;  %v1249_v52 = vpop.eup %1248 }
 0x386   : > { %v710_v60 = vmul.f32 %v1249_v52, %v678_v56 }
 0x3ef   : > { %v776_v9 = vpop.xlane.xlu1 %775 }
 0x3f0   : > { %v791_v17 = vadd.f32 %v776_v9, %v703_v5 }
 0x3f2   : > { %800 = vst.msk [vmem:[#allocation4] sm:$0xff] %vm799_vm1, %v791_v17 }
 0x3f3   : > { %v778_v10 = vpop.xlane.xlu0 %777 }
 0x3f4   : > { %v792_v18 = vadd.f32 %v778_v10, %v704_v6 }
 0x3f6   : > { %801 = vst.msk [vmem:[#allocation4 + $0x8] sm:$0xff] %vm799_vm1, %v792_v18 }
 0x3f7   : > { %v780_v39 = vpop.xlane.xlu0 %779 }
 0x3f8   : > { %v793_v16 = vadd.f32 %v780_v39, %v705_v21 }
 0x3fa   : > { %802 = vst.msk [vmem:[#allocation4 + $0x10] sm:$0xff] %vm799_vm1, %v793_v16 }
 0x3fb   : > { %v782_v42 = vpop.xlane.xlu1 %781 }
 0x3fc   : > { %v794_v23 = vadd.f32 %v782_v42, %v706_v26 }
 0x3fe   : > { %803 = vst.msk [vmem:[#allocation4 + $0x18] sm:$0xff] %vm799_vm1, %v794_v23 }
 0x3ff   : > { %v784_v44 = vpop.xlane.xlu0 %783 }
 0x400   : > { %v795_v46 = vadd.f32 %v784_v44, %v707_v29 }
 0x402   : > { %804 = vst.msk [vmem:[#allocation4 + $0x20] sm:$0xff] %vm799_vm1, %v795_v46 }
 0x403   : > { %v786_v30 = vpop.xlane.xlu1 %785 }
 0x404   : > { %v796_v48 = vadd.f32 %v786_v30, %v708_v47 }
 0x406   : > { %805 = vst.msk [vmem:[#allocation4 + $0x28] sm:$0xff] %vm799_vm1, %v796_v48 }
 0x407   : > { %v788_v53 = vpop.xlane.xlu0 %787 }
 0x408   : > { %v797_v57 = vadd.f32 %v788_v53, %v709_v49 }
 0x40a   : > { %806 = vst.msk [vmem:[#allocation4 + $0x30] sm:$0xff] %vm799_vm1, %v797_v57 }
 0x40b   : > { %v790_v61 = vpop.xlane.xlu1 %789 }
 0x40c   : > { %v798_v0 = vadd.f32 %v790_v61, %v710_v60 }
 0x40e   : > { %807 = vst.msk [vmem:[#allocation4 + $0x38] sm:$0xff] %vm799_vm1, %v798_v0 }
 0x40f PF: > { %p1058_p6 = scmp.ne.s32.totalorder %s1282_s18, 1 }
 0x410   : > { %v830_v3 = vld [vmem:[#allocation4 + $0x10] sm:$0xff] (!%p1058_p6)  ;;  %v1295_v4 = vmov (!%p1058_p6), 0   ;;  %v828_v11 = vld [vmem:[#allocation4] sm:$0xff] (!%p1058_p6)  ;;  %v831_v12 = vld [vmem:[#allocation4 + $0x18] sm:$0xff] (!%p1058_p6) }
 0x411   : > { %819 = sbr.rel (%p1058_p6) target bundleno = 1200 (0x4b0), region = 52  ;;  %1251 = vset.pattern.permute.xlu1 (!%p1058_p6), %v1295_v4  ;;  %1250 = vset.pattern.permute.xlu0 (!%p1058_p6), %v1295_v4  ;;  %1252 = vlog2.f32 (!%p1058_p6), %v830_v3  ;;  %v829_v19 = vld [vmem:[#allocation4 + $0x8] sm:$0xff] (!%p1058_p6)  ;;  %v832_v27 = vld [vmem:[#allocation4 + $0x20] sm:$0xff] (!%p1058_p6)  ;;  %v834_v33 = vld [vmem:[#allocation4 + $0x30] sm:$0xff] (!%p1058_p6) }
 0x412   : > { %1254 = vlog2.f32 (!%p1058_p6), %v828_v11  ;;  %v833_v20 = vld [vmem:[#allocation4 + $0x28] sm:$0xff] (!%p1058_p6)  ;;  %v822_v35 = vld [vmem:[#allocation3 + $0x10] sm:$0xff] (!%p1058_p6)  ;;  %v820_v38 = vld [vmem:[#allocation3] sm:$0xff] (!%p1058_p6) }
 0x413   : > { %1256 = vlog2.f32 (!%p1058_p6), %v831_v12  ;;  %v823_v7 = vld [vmem:[#allocation3 + $0x18] sm:$0xff] (!%p1058_p6)  ;;  %v821_v2 = vld [vmem:[#allocation3 + $0x8] sm:$0xff] (!%p1058_p6)  ;;  %v824_v22 = vld [vmem:[#allocation3 + $0x20] sm:$0xff] (!%p1058_p6) }
 0x414   : > { %1258 = vlog2.f32 (!%p1058_p6), %v829_v19  ;;  %v825_v39 = vld [vmem:[#allocation3 + $0x28] sm:$0xff] (!%p1058_p6)  ;;  %v827_v43 = vld [vmem:[#allocation3 + $0x38] sm:$0xff] (!%p1058_p6)  ;;  %v826_v29 = vld [vmem:[#allocation3 + $0x30] sm:$0xff] (!%p1058_p6) }
 0x415   : > { %v835_v28 = vld [vmem:[#allocation4 + $0x38] sm:$0xff] (!%p1058_p6)  ;;  %1260 = vlog2.f32 (!%p1058_p6), %v833_v20 }
 0x416   : > { %1262 = vlog2.f32 (!%p1058_p6), %v832_v27 }
 0x417   : > { %1264 = vlog2.f32 (!%p1058_p6), %v835_v28 }
 0x418   : > { %1266 = vlog2.f32 %v834_v33 }
 0x41b   : > { %v1253_v34 = vpop.eup %1252 }
 0x41c   : > { %v1255_v36 = vpop.eup %1254  ;;  %v841_v37 = vmul.f32 0.6931472, %v1253_v34 }
 0x41d   : > { %v1257_v1 = vpop.eup %1256  ;;  %v837_v5 = vmul.f32 0.6931472, %v1255_v36 }
 0x41e   : > { %v1259_v9 = vpop.eup %1258  ;;  %v854_v13 = vadd.f32 %v841_v37, %v822_v35  ;;  %v843_v17 = vmul.f32 0.6931472, %v1257_v1 }
 0x41f   : > { %v1261_v6 = vpop.eup %1260  ;;  %v852_v8 = vadd.f32 %v837_v5, %v820_v38  ;;  %v839_v10 = vmul.f32 0.6931472, %v1259_v9 }
 0x420   : > { %v1263_v14 = vpop.eup %1262  ;;  %872 = vperm.xlu1 %1251, %v854_v13   ;;  %v855_v18 = vadd.f32 %v843_v17, %v823_v7  ;;  %v847_v15 = vmul.f32 0.6931472, %v1261_v6 }
 0x421   : > { %v1265_v21 = vpop.eup %1264  ;;  %862 = vperm.xlu0 %1250, %v852_v8   ;;  %v853_v25 = vadd.f32 %v839_v10, %v821_v2  ;;  %v845_v40 = vmul.f32 0.6931472, %v1263_v14 }
 0x422   : > { %v1267_v16 = vpop.eup %1266  ;;  %v857_v26 = vadd.f32 %v847_v15, %v825_v39  ;;  %v851_v41 = vmul.f32 0.6931472, %v1265_v21 }
 0x423   : > { %v856_v42 = vadd.f32 %v845_v40, %v824_v22  ;;  %v849_v23 = vmul.f32 0.6931472, %v1267_v16 }
 0x424   : > { %877 = vperm.xlu1 %1251, %v855_v18   ;;  %v859_v31 = vadd.f32 %v851_v41, %v827_v43 }
 0x425   : > { %867 = vperm.xlu0 %1250, %v853_v25   ;;  %v858_v44 = vadd.f32 %v849_v23, %v826_v29 }
 0x428   : > { %887 = vperm.xlu1 %1251, %v857_v26  }
 0x429   : > { %882 = vperm.xlu0 %1250, %v856_v42  }
 0x42c   : > { %897 = vperm.xlu1 %1251, %v859_v31  }
 0x42d   : > { %892 = vperm.xlu0 %1250, %v858_v44  }
 0x49f   : > { %v873_v45 = vpop.permute.xlu1 %872 }
 0x4a0   : > { %v902_v46 = vsub.f32 %v1429_v50, %v873_v45  ;;  %v863_v47 = vpop.permute.xlu0 %862 }
 0x4a1   : > { %v900_v24 = vsub.f32 %v1433_v54, %v863_v47 }
 0x4a2   : > { %910 = vst [vmem:[%s1621_s5 + $0x10] sm:$0xff] %v902_v46 }
 0x4a3   : > { %908 = vst [vmem:[%s1621_s5] sm:$0xff] %v900_v24  ;;  %v878_v30 = vpop.permute.xlu1 %877 }
 0x4a4   : > { %v903_v32 = vsub.f32 %v1437_v58, %v878_v30  ;;  %v868_v48 = vpop.permute.xlu0 %867 }
 0x4a5   : > { %v901_v49 = vsub.f32 %v1441_v62, %v868_v48 }
 0x4a6   : > { %911 = vst [vmem:[%s1621_s5 + $0x18] sm:$0xff] %v903_v32 }
 0x4a7   : > { %909 = vst [vmem:[%s1621_s5 + $0x8] sm:$0xff] %v901_v49  ;;  %v888_v50 = vpop.permute.xlu1 %887 }
 0x4a8   : > { %v905_v54 = vsub.f32 %v1443_v63, %v888_v50  ;;  %v883_v52 = vpop.permute.xlu0 %882 }
 0x4a9   : > { %v904_v53 = vsub.f32 %v1435_v55, %v883_v52 }
 0x4aa   : > { %913 = vst [vmem:[%s1621_s5 + $0x28] sm:$0xff] %v905_v54 }
 0x4ab   : > { %912 = vst [vmem:[%s1621_s5 + $0x20] sm:$0xff] %v904_v53  ;;  %v898_v58 = vpop.permute.xlu1 %897 }
 0x4ac   : > { %v907_v62 = vsub.f32 %v1439_v59, %v898_v58  ;;  %v893_v56 = vpop.permute.xlu0 %892 }
 0x4ad   : > { %v906_v57 = vsub.f32 %v1431_v51, %v893_v56 }
 0x4ae   : > { %915 = vst [vmem:[%s1621_s5 + $0x38] sm:$0xff] %v907_v62 }
 0x4af   : > { %914 = vst [vmem:[%s1621_s5 + $0x30] sm:$0xff] %v906_v57 }
 0x4b0 PF: > { %s15_s20 = sadd.s32 1, %s1290_s20   ;;  %s1622_s18 = smov %s1286_s19 }
 0x4b1   : > { %p12_p7 = scmp.ge.s32.totalorder %s15_s20, 4   ;;  %s1623_s19 = smov %s1625_s21 }
 0x4b3   :  { %14 = sbr.rel (!%p12_p7) target bundleno = 2 (0x2), region = 88 }

// kernel: decoder_forward.4
= control target key start
LH: loop header
LB: loop body
LE: loop exit
PB: predicated region body
PF: predicated region fallthrough
CT: control target
= control target key end

     0   :  { %v1677_v1 = vmov 0.0   ;;  %vm1678_vm0 = vmmov 0   ;;  %s2240_s2 = inlined_call_operand.vmem [shape: bf16[384,128], index: 2, kind: input, shape index: {}]   ;;  %s2241_s1 = inlined_call_operand.vmem [shape: f32[8,128], index: 1, kind: input, shape index: {}]   ;;  %s2242_s0 = inlined_call_operand.vmem [shape: bf16[8,8,384], index: 0, kind: input, shape index: {}]   ;;  %s2243_s3 = inlined_call_operand.vmem [shape: f32[1,128], index: 3, kind: input, shape index: {}]   ;;  %s2244_s4 = inlined_call_operand.vmem [shape: bf16[8,8,128], index: 4, kind: output, shape index: {}]  }
   0x1   :  { %v1707_v0 = vld [vmem:[%s2240_s2 + $0x40] sm:$0xff]   ;;  %1402 = vmatprep.subr.bf16.mxu1 %v1677_v1  ;;  %1418 = vmatprep.mubr.msk.bf16.mxu1 %vm1678_vm0, %v1677_v1  ;;  %v1721_v3 = vld [vmem:[%s2240_s2 + $0x48] sm:$0xff]   ;;  %v1738_v6 = vld [vmem:[%s2240_s2 + $0x50] sm:$0xff]  }
   0x2   :  { %v1715_v2 = vld [vmem:[%s2240_s2] sm:$0xff]   ;;  %1186 = vmatprep.subr.bf16.mxu0 %v1707_v0  ;;  %v1728_v4 = vld [vmem:[%s2240_s2 + $0x8] sm:$0xff]   ;;  %v1752_v8 = vld [vmem:[%s2240_s2 + $0x10] sm:$0xff]  }
   0x3   :  { %1187 = vmatpush3.bf16.xpose.msra.mxu0 %v1715_v2  ;;  %v1733_v5 = vld [vmem:[%s2240_s2 + $0x80] sm:$0xff]   ;;  %v1747_v7 = vld [vmem:[%s2240_s2 + $0x88] sm:$0xff]   ;;  %v1757_v9 = vld [vmem:[%s2240_s2 + $0x58] sm:$0xff]  }
   0x4   :  { %1188 = vmatprep.subr.bf16.mxu0 %v1721_v3  ;;  %1403 = vmatpush3.bf16.xpose.msra.mxu1 %v1733_v5  ;;  %v1766_v10 = vld [vmem:[%s2240_s2 + $0x90] sm:$0xff]   ;;  %v1771_v11 = vld [vmem:[%s2241_s1] sm:$0xff]  ;;  %v1778_v13 = vld [vmem:[%s2240_s2 + $0x18] sm:$0xff]  }
   0x5   :  { %1404 = vmatprep.subr.bf16.mxu1 %v1677_v1  ;;  %v79_v12 = vpack.c.bf16 %v1771_v11, %v1771_v11  ;;  %v1783_v14 = vld [vmem:[%s2240_s2 + $0x60] sm:$0xff]   ;;  %v1792_v15 = vld [vmem:[%s2240_s2 + $0x98] sm:$0xff]   ;;  %v1802_v17 = vld [vmem:[%s2240_s2 + $0x68] sm:$0xff]  }
   0x6   :  { %v1797_v16 = vld [vmem:[%s2240_s2 + $0x20] sm:$0xff]   ;;  %v1816_v19 = vld [vmem:[%s2240_s2 + $0x28] sm:$0xff]   ;;  %v1821_v20 = vld [vmem:[%s2240_s2 + $0x70] sm:$0xff]  }
   0x7   :  { %1202 = vmatprep.mubr.bf16.mxu0 %v79_v12  ;;  %v1811_v18 = vld [vmem:[%s2240_s2 + $0xa0] sm:$0xff]   ;;  %v1830_v21 = vld [vmem:[%s2240_s2 + $0xa8] sm:$0xff]   ;;  %v1835_v22 = vld [vmem:[%s2240_s2 + $0x30] sm:$0xff]  }
   0x8   :  { %v1840_v23 = vld [vmem:[%s2240_s2 + $0x78] sm:$0xff]   ;;  %v1849_v24 = vld [vmem:[%s2240_s2 + $0xb0] sm:$0xff]   ;;  %v74_v27 = vld [vmem:[%s2242_s0] sm:$0xff] }
   0x9   :  { %v1854_v25 = vld [vmem:[%s2240_s2 + $0x38] sm:$0xff]   ;;  %v76_v28 = vunpack.c.l.bf16 %v74_v27  ;;  %v77_v30 = vunpack.c.h.bf16 %v74_v27  ;;  %v1907_v45 = vld [vmem:[%s2243_s3] ss:$0 sm:$0xff]  ;;  %v75_v46 = vld [vmem:[%s2242_s0 + $0x8] sm:$0xf] }
   0xa   :  { %v1863_v26 = vld [vmem:[%s2240_s2 + $0xb8] sm:$0xff]   ;;  %v78_v49 = vunpack.c.l.bf16 %v75_v46  ;;  %v1151_v60 = vld [vmem:[%s2242_s0 + $0xc] sm:$0xff] }
   0xb   :  { %1189 = vmatpush3.bf16.xpose.msra.mxu0 %v1728_v4  ;;  %v338_v61 = vunpack.c.l.bf16 %v1151_v60 }
   0xc   :  { %1190 = vmatprep.subr.bf16.mxu0 %v1738_v6  ;;  %1405 = vmatpush3.bf16.xpose.msra.mxu1 %v1747_v7 }
   0xd   :  { %1406 = vmatprep.subr.bf16.mxu1 %v1677_v1 }
  0x13   :  { %1191 = vmatpush3.bf16.xpose.msra.mxu0 %v1752_v8 }
  0x14   :  { %1192 = vmatprep.subr.bf16.mxu0 %v1757_v9  ;;  %1407 = vmatpush3.bf16.xpose.msra.mxu1 %v1766_v10 }
  0x15   :  { %1408 = vmatprep.subr.bf16.mxu1 %v1677_v1 }
  0x1b   :  { %1193 = vmatpush3.bf16.xpose.msra.mxu0 %v1778_v13 }
  0x1c   :  { %1194 = vmatprep.subr.bf16.mxu0 %v1783_v14  ;;  %1409 = vmatpush3.bf16.xpose.msra.mxu1 %v1792_v15 }
  0x1d   :  { %1410 = vmatprep.subr.bf16.mxu1 %v1677_v1 }
  0x23   :  { %1195 = vmatpush3.bf16.xpose.msra.mxu0 %v1797_v16 }
  0x24   :  { %1196 = vmatprep.subr.bf16.mxu0 %v1802_v17  ;;  %1411 = vmatpush3.bf16.xpose.msra.mxu1 %v1811_v18 }
  0x25   :  { %1412 = vmatprep.subr.bf16.mxu1 %v1677_v1 }
  0x2b   :  { %1197 = vmatpush3.bf16.xpose.msra.mxu0 %v1816_v19 }
  0x2c   :  { %1198 = vmatprep.subr.bf16.mxu0 %v1821_v20  ;;  %1413 = vmatpush3.bf16.xpose.msra.mxu1 %v1830_v21 }
  0x2d   :  { %1414 = vmatprep.subr.bf16.mxu1 %v1677_v1 }
  0x33   :  { %1199 = vmatpush3.bf16.xpose.msra.mxu0 %v1835_v22 }
  0x34   :  { %1200 = vmatprep.subr.bf16.mxu0 %v1840_v23  ;;  %1415 = vmatpush3.bf16.xpose.msra.mxu1 %v1849_v24 }
  0x35   :  { %1416 = vmatprep.subr.bf16.mxu1 %v1677_v1 }
  0x3b   :  { %1201 = vmatpush3.bf16.xpose.msra.mxu0 %v1854_v25 }
  0x3c   :  { %1213 = vmatprep.subr.bf16.mxu0 %v1707_v0  ;;  %1417 = vmatpush3.bf16.xpose.msra.mxu1 %v1863_v26 }
  0x3d   :  { %1422 = vmatprep.subr.bf16.mxu1 %v1677_v1 }
  0x42   :  { %1203 = vmatmul.mubr.bf16.vlgmr.msra.gmra.mrb[0].mxu0 %v79_v12 }
  0x43   :  { %1214 = vmatpush3.bf16.xpose.msra.mxu0 %v1715_v2  ;;  %1419 = vmatmul.mubr.bf16.vlgmr.msra.gmra.mrb[0].mxu1 %v79_v12  ;;  %v339_v12 = vunpack.c.h.bf16 %v1151_v60 }
  0x44   :  { %1215 = vmatprep.subr.bf16.mxu0 %v1721_v3  ;;  %1423 = vmatpush3.bf16.xpose.msra.mxu1 %v1733_v5 }
  0x45   :  { %1438 = vmatprep.mubr.msk.bf16.mxu1 %vm1678_vm0, %v1677_v1  ;;  %1424 = vmatprep.subr.bf16.mxu1 %v1677_v1 }
  0x4b   :  { %1216 = vmatpush3.bf16.xpose.msra.mxu0 %v1728_v4 }
  0x4c   :  { %1217 = vmatprep.subr.bf16.mxu0 %v1738_v6  ;;  %1425 = vmatpush3.bf16.xpose.msra.mxu1 %v1747_v7 }
  0x4d   :  { %1426 = vmatprep.subr.bf16.mxu1 %v1677_v1 }
  0x53   :  { %1218 = vmatpush3.bf16.xpose.msra.mxu0 %v1752_v8 }
  0x54   :  { %1219 = vmatprep.subr.bf16.mxu0 %v1757_v9  ;;  %1427 = vmatpush3.bf16.xpose.msra.mxu1 %v1766_v10 }
  0x55   :  { %1428 = vmatprep.subr.bf16.mxu1 %v1677_v1 }
  0x5b   :  { %1220 = vmatpush3.bf16.xpose.msra.mxu0 %v1778_v13 }
  0x5c   :  { %1221 = vmatprep.subr.bf16.mxu0 %v1783_v14  ;;  %1429 = vmatpush3.bf16.xpose.msra.mxu1 %v1792_v15 }
  0x5d   :  { %1430 = vmatprep.subr.bf16.mxu1 %v1677_v1 }
  0x63   :  { %1222 = vmatpush3.bf16.xpose.msra.mxu0 %v1797_v16 }
  0x64   :  { %1223 = vmatprep.subr.bf16.mxu0 %v1802_v17  ;;  %1431 = vmatpush3.bf16.xpose.msra.mxu1 %v1811_v18 }
  0x65   :  { %1432 = vmatprep.subr.bf16.mxu1 %v1677_v1 }
  0x6b   :  { %1224 = vmatpush3.bf16.xpose.msra.mxu0 %v1816_v19 }
  0x6c   :  { %1225 = vmatprep.subr.bf16.mxu0 %v1821_v20  ;;  %1433 = vmatpush3.bf16.xpose.msra.mxu1 %v1830_v21 }
  0x6d   :  { %1434 = vmatprep.subr.bf16.mxu1 %v1677_v1 }
  0x73   :  { %1226 = vmatpush3.bf16.xpose.msra.mxu0 %v1835_v22 }
  0x74   :  { %1227 = vmatprep.subr.bf16.mxu0 %v1840_v23  ;;  %1435 = vmatpush3.bf16.xpose.msra.mxu1 %v1849_v24 }
  0x75   :  { %1436 = vmatprep.subr.bf16.mxu1 %v1677_v1 }
  0x7b   :  { %1228 = vmatpush3.bf16.xpose.msra.mxu0 %v1854_v25 }
  0x7c   :  { %1240 = vmatprep.subr.bf16.mxu0 %v1707_v0  ;;  %1437 = vmatpush3.bf16.xpose.msra.mxu1 %v1863_v26 }
  0x7d   :  { %1442 = vmatprep.subr.bf16.mxu1 %v1677_v1 }
 0x115   :  { %v258_v29 = vpop.f32.mrb[0].mxu0 }
 0x116   :  { %v305_v31 = vadd.f32 %v258_v29, %v76_v28  ;;  %v260_v32 = vpop.f32.mrb[1].mxu0  ;;  %v299_v37 = vpop.f32.mrb[0].mxu1 }
 0x117   :  { %v262_v33 = vpop.f32.mrb[2].mxu0  ;;  %v312_v36 = vadd.f32 %v260_v32, %v77_v30  ;;  %v1420_v38 = vpop.f32.mrb[1].mxu1  ;;  %v325_v48 = vadd.f32 %v1907_v45, %v299_v37 }
 0x118   :  { %v1148_v34 = vmul.f32 -1.442695, %v305_v31  ;;  %v263_v35 = vpop.f32.mrb[3].mxu0  ;;  %v302_v40 = vpop.f32.mrb[2].mxu1 }
 0x119   :  { %v1149_v39 = vmul.f32 -1.442695, %v312_v36  ;;  %v1421_v41 = vpop.f32.mrb[3].mxu1 }
 0x11a   :  { %1588 = vpow2.f32 %v1148_v34 }
 0x11b   :  { %1590 = vpow2.f32 %v1149_v39  ;;  %v1961_v39 = vld [vmem:[%s2242_s0 + $0x14] ss:$12 sps:$4 sm:$0xff]  }
 0x124   :  { %v1589_v42 = vpop.eup %1588 }
 0x125   :  { %v309_v43 = vadd.f32 1.0, %v1589_v42  ;;  %v1591_v44 = vpop.eup %1590  ;;  %v340_v42 = vunpack.c.l.bf16 %v1961_v39 }
 0x126   :  { %v316_v47 = vadd.f32 1.0, %v1591_v44 }
 0x127   :  { %1592 = vrcp.f32 %v309_v43 }
 0x128   :  { %1594 = vrcp.f32 %v316_v47 }
 0x131   :  { %v1593_v50 = vpop.eup %1592 }
 0x132   :  { %v326_v51 = vmul.f32 %v1593_v50, %v325_v48  ;;  %v1595_v53 = vpop.eup %1594 }
 0x133   :  { %v329_v54 = vsub.f32 1.0, %v1595_v53  ;;  %v331_v57 = vmul.f32 %v1595_v53, %v1771_v11 }
 0x134   :  { %v327_v52 = vadd.f32 %v326_v51, %v78_v49 }
 0x136   :  { %1596 = vtanh.f32 %v327_v52 }
 0x140   :  { %v1597_v55 = vpop.eup %1596 }
 0x141   :  { %v330_v56 = vmul.f32 %v1597_v55, %v329_v54  ;;  %v1156_v54 = vld [vmem:[%s2242_s0 + $0x18] sm:$0xff] }
 0x142   :  { %v450_v55 = vunpack.c.l.bf16 %v1156_v54 }
 0x143   :  { %v1914_v58 = vadd.f32 %v331_v57, %v330_v56 }
 0x145   :  { %v333_v59 = vpack.c.bf16 %v1914_v58, %v1914_v58 }
 0x147   :  { %334 = vst [vmem:[%s2244_s4] sm:$0xf] %v333_v59  ;;  %1229 = vmatprep.mubr.bf16.mxu0 %v333_v59  ;;  %1439 = vmatmul.mubr.bf16.vlgmr.msra.gmra.mrb[4].mxu1 %v333_v59 }
 0x148   :  { %1230 = vmatmul.mubr.bf16.vlgmr.msra.gmra.mrb[4].mxu0 %v333_v59  ;;  %1443 = vmatpush3.bf16.xpose.msra.mxu1 %v1733_v5  ;;  %v451_v59 = vunpack.c.h.bf16 %v1156_v54 }
 0x149   :  { %1241 = vmatpush3.bf16.xpose.msra.mxu0 %v1715_v2  ;;  %1444 = vmatprep.subr.bf16.mxu1 %v1677_v1 }
 0x14a   :  { %1242 = vmatprep.subr.bf16.mxu0 %v1721_v3  ;;  %1458 = vmatprep.mubr.msk.bf16.mxu1 %vm1678_vm0, %v1677_v1 }
 0x150   :  { %1445 = vmatpush3.bf16.xpose.msra.mxu1 %v1747_v7 }
 0x151   :  { %1243 = vmatpush3.bf16.xpose.msra.mxu0 %v1728_v4  ;;  %1446 = vmatprep.subr.bf16.mxu1 %v1677_v1 }
 0x152   :  { %1244 = vmatprep.subr.bf16.mxu0 %v1738_v6 }
 0x158   :  { %1447 = vmatpush3.bf16.xpose.msra.mxu1 %v1766_v10 }
 0x159   :  { %1245 = vmatpush3.bf16.xpose.msra.mxu0 %v1752_v8  ;;  %1448 = vmatprep.subr.bf16.mxu1 %v1677_v1 }
 0x15a   :  { %1246 = vmatprep.subr.bf16.mxu0 %v1757_v9 }
 0x160   :  { %1449 = vmatpush3.bf16.xpose.msra.mxu1 %v1792_v15 }
 0x161   :  { %1247 = vmatpush3.bf16.xpose.msra.mxu0 %v1778_v13  ;;  %1450 = vmatprep.subr.bf16.mxu1 %v1677_v1 }
 0x162   :  { %1248 = vmatprep.subr.bf16.mxu0 %v1783_v14 }
 0x168   :  { %1451 = vmatpush3.bf16.xpose.msra.mxu1 %v1811_v18 }
 0x169   :  { %1249 = vmatpush3.bf16.xpose.msra.mxu0 %v1797_v16  ;;  %1452 = vmatprep.subr.bf16.mxu1 %v1677_v1 }
 0x16a   :  { %1250 = vmatprep.subr.bf16.mxu0 %v1802_v17 }
 0x170   :  { %1453 = vmatpush3.bf16.xpose.msra.mxu1 %v1830_v21 }
 0x171   :  { %1251 = vmatpush3.bf16.xpose.msra.mxu0 %v1816_v19  ;;  %1454 = vmatprep.subr.bf16.mxu1 %v1677_v1 }
 0x172   :  { %1252 = vmatprep.subr.bf16.mxu0 %v1821_v20 }
 0x178   :  { %1455 = vmatpush3.bf16.xpose.msra.mxu1 %v1849_v24 }
 0x179   :  { %1253 = vmatpush3.bf16.xpose.msra.mxu0 %v1835_v22  ;;  %1456 = vmatprep.subr.bf16.mxu1 %v1677_v1 }
 0x17a   :  { %1254 = vmatprep.subr.bf16.mxu0 %v1840_v23 }
 0x180   :  { %1457 = vmatpush3.bf16.xpose.msra.mxu1 %v1863_v26 }
 0x181   :  { %1255 = vmatpush3.bf16.xpose.msra.mxu0 %v1854_v25  ;;  %1462 = vmatprep.subr.bf16.mxu1 %v1677_v1 }
 0x182   :  { %1267 = vmatprep.subr.bf16.mxu0 %v1707_v0 }
 0x21a   :  { %v416_v62 = vpop.f32.mrb[4].mxu1 }
 0x21b   :  { %v375_v63 = vpop.f32.mrb[4].mxu0  ;;  %v1440_v11 = vpop.f32.mrb[5].mxu1  ;;  %v436_v41 = vadd.f32 %v1907_v45, %v416_v62 }
 0x21c   :  { %v422_v27 = vadd.f32 %v375_v63, %v338_v61  ;;  %v377_v28 = vpop.f32.mrb[5].mxu0  ;;  %v419_v29 = vpop.f32.mrb[6].mxu1 }
 0x21d   :  { %v379_v30 = vpop.f32.mrb[6].mxu0  ;;  %v1441_v31 = vpop.f32.mrb[7].mxu1  ;;  %v429_v34 = vadd.f32 %v377_v28, %v339_v12 }
 0x21e   :  { %v1153_v32 = vmul.f32 -1.442695, %v422_v27  ;;  %v380_v33 = vpop.f32.mrb[7].mxu0 }
 0x21f   :  { %v1154_v35 = vmul.f32 -1.442695, %v429_v34 }
 0x220   :  { %1598 = vpow2.f32 %v1153_v32 }
 0x221   :  { %1600 = vpow2.f32 %v1154_v35  ;;  %v452_v35 = vunpack.c.h.bf16 %v1961_v39  ;;  %v1161_v39 = vld [vmem:[%s2242_s0 + $0x24] sm:$0xff] }
 0x22a   :  { %v1599_v36 = vpop.eup %1598 }
 0x22b   :  { %v426_v37 = vadd.f32 1.0, %v1599_v36  ;;  %v1601_v38 = vpop.eup %1600 }
 0x22c   :  { %v433_v40 = vadd.f32 1.0, %v1601_v38 }
 0x22d   :  { %1602 = vrcp.f32 %v426_v37 }
 0x22e   :  { %1604 = vrcp.f32 %v433_v40 }
 0x237   :  { %v1603_v43 = vpop.eup %1602 }
 0x238   :  { %v437_v44 = vmul.f32 %v1603_v43, %v436_v41  ;;  %v1605_v47 = vpop.eup %1604 }
 0x239   :  { %v440_v48 = vsub.f32 1.0, %v1605_v47  ;;  %v442_v51 = vmul.f32 %v1605_v47, %v1914_v58 }
 0x23a   :  { %v438_v46 = vadd.f32 %v437_v44, %v340_v42 }
 0x23c   :  { %1606 = vtanh.f32 %v438_v46 }
 0x246   :  { %v1607_v49 = vpop.eup %1606 }
 0x247   :  { %v441_v50 = vmul.f32 %v1607_v49, %v440_v48  ;;  %v562_v48 = vunpack.c.l.bf16 %v1161_v39 }
 0x249   :  { %v1966_v52 = vadd.f32 %v442_v51, %v441_v50 }
 0x24b   :  { %v444_v53 = vpack.c.bf16 %v1966_v52, %v1966_v52 }
 0x24d   :  { %1155 = vst [vmem:[%s2244_s4 + $0x4] sm:$0xf] %v444_v53  ;;  %1256 = vmatprep.mubr.bf16.mxu0 %v444_v53  ;;  %1459 = vmatmul.mubr.bf16.vlgmr.msra.gmra.mrb[8].mxu1 %v444_v53 }
 0x24e   :  { %1257 = vmatmul.mubr.bf16.vlgmr.msra.gmra.mrb[8].mxu0 %v444_v53  ;;  %1463 = vmatpush3.bf16.xpose.msra.mxu1 %v1733_v5 }
 0x24f   :  { %1268 = vmatpush3.bf16.xpose.msra.mxu0 %v1715_v2  ;;  %1464 = vmatprep.subr.bf16.mxu1 %v1677_v1 }
 0x250   :  { %1269 = vmatprep.subr.bf16.mxu0 %v1721_v3  ;;  %1478 = vmatprep.mubr.msk.bf16.mxu1 %vm1678_vm0, %v1677_v1 }
 0x256   :  { %1465 = vmatpush3.bf16.xpose.msra.mxu1 %v1747_v7 }
 0x257   :  { %1270 = vmatpush3.bf16.xpose.msra.mxu0 %v1728_v4  ;;  %1466 = vmatprep.subr.bf16.mxu1 %v1677_v1 }
 0x258   :  { %1271 = vmatprep.subr.bf16.mxu0 %v1738_v6 }
 0x25e   :  { %1467 = vmatpush3.bf16.xpose.msra.mxu1 %v1766_v10 }
 0x25f   :  { %1272 = vmatpush3.bf16.xpose.msra.mxu0 %v1752_v8  ;;  %1468 = vmatprep.subr.bf16.mxu1 %v1677_v1 }
 0x260   :  { %1273 = vmatprep.subr.bf16.mxu0 %v1757_v9 }
 0x266   :  { %1469 = vmatpush3.bf16.xpose.msra.mxu1 %v1792_v15 }
 0x267   :  { %1274 = vmatpush3.bf16.xpose.msra.mxu0 %v1778_v13  ;;  %1470 = vmatprep.subr.bf16.mxu1 %v1677_v1 }
 0x268   :  { %1275 = vmatprep.subr.bf16.mxu0 %v1783_v14 }
 0x26e   :  { %1471 = vmatpush3.bf16.xpose.msra.mxu1 %v1811_v18 }
 0x26f   :  { %1276 = vmatpush3.bf16.xpose.msra.mxu0 %v1797_v16  ;;  %1472 = vmatprep.subr.bf16.mxu1 %v1677_v1 }
 0x270   :  { %1277 = vmatprep.subr.bf16.mxu0 %v1802_v17 }
 0x276   :  { %1473 = vmatpush3.bf16.xpose.msra.mxu1 %v1830_v21 }
 0x277   :  { %1278 = vmatpush3.bf16.xpose.msra.mxu0 %v1816_v19  ;;  %1474 = vmatprep.subr.bf16.mxu1 %v1677_v1 }
 0x278   :  { %1279 = vmatprep.subr.bf16.mxu0 %v1821_v20 }
 0x27e   :  { %1475 = vmatpush3.bf16.xpose.msra.mxu1 %v1849_v24 }
 0x27f   :  { %1280 = vmatpush3.bf16.xpose.msra.mxu0 %v1835_v22  ;;  %1476 = vmatprep.subr.bf16.mxu1 %v1677_v1 }
 0x280   :  { %1281 = vmatprep.subr.bf16.mxu0 %v1840_v23 }
 0x286   :  { %1477 = vmatpush3.bf16.xpose.msra.mxu1 %v1863_v26 }
 0x287   :  { %1282 = vmatpush3.bf16.xpose.msra.mxu0 %v1854_v25  ;;  %1482 = vmatprep.subr.bf16.mxu1 %v1677_v1 }
 0x288   :  { %1294 = vmatprep.subr.bf16.mxu0 %v1707_v0 }
 0x320   :  { %v528_v56 = vpop.f32.mrb[8].mxu1 }
 0x321   :  { %v487_v57 = vpop.f32.mrb[8].mxu0  ;;  %v1460_v58 = vpop.f32.mrb[9].mxu1  ;;  %v548_v34 = vadd.f32 %v1907_v45, %v528_v56 }
 0x322   :  { %v534_v60 = vadd.f32 %v487_v57, %v450_v55  ;;  %v489_v61 = vpop.f32.mrb[9].mxu0  ;;  %v531_v62 = vpop.f32.mrb[10].mxu1 }
 0x323   :  { %v491_v63 = vpop.f32.mrb[10].mxu0  ;;  %v1461_v11 = vpop.f32.mrb[11].mxu1  ;;  %v541_v28 = vadd.f32 %v489_v61, %v451_v59 }
 0x324   :  { %v1158_v12 = vmul.f32 -1.442695, %v534_v60  ;;  %v492_v27 = vpop.f32.mrb[11].mxu0 }
 0x325   :  { %v1159_v29 = vmul.f32 -1.442695, %v541_v28 }
 0x326   :  { %1608 = vpow2.f32 %v1158_v12  ;;  %v2060_v12 = vld [vmem:[%s2242_s0 + $0x2c] ss:$12 sps:$4 sm:$0xff]  }
 0x327   :  { %1610 = vpow2.f32 %v1159_v29  ;;  %v564_v29 = vunpack.c.l.bf16 %v2060_v12 }
 0x330   :  { %v1609_v30 = vpop.eup %1608 }
 0x331   :  { %v538_v31 = vadd.f32 1.0, %v1609_v30  ;;  %v1611_v32 = vpop.eup %1610 }
 0x332   :  { %v545_v33 = vadd.f32 1.0, %v1611_v32 }
 0x333   :  { %1612 = vrcp.f32 %v538_v31 }
 0x334   :  { %1614 = vrcp.f32 %v545_v33 }
 0x33d   :  { %v1613_v36 = vpop.eup %1612 }
 0x33e   :  { %v549_v37 = vmul.f32 %v1613_v36, %v548_v34  ;;  %v1615_v40 = vpop.eup %1614 }
 0x33f   :  { %v552_v41 = vsub.f32 1.0, %v1615_v40  ;;  %v554_v44 = vmul.f32 %v1615_v40, %v1966_v52  ;;  %v563_v52 = vunpack.c.h.bf16 %v1161_v39 }
 0x340   :  { %v550_v38 = vadd.f32 %v549_v37, %v452_v35 }
 0x342   :  { %1616 = vtanh.f32 %v550_v38 }
 0x34c   :  { %v1617_v42 = vpop.eup %1616 }
 0x34d   :  { %v553_v43 = vmul.f32 %v1617_v42, %v552_v41  ;;  %v1166_v41 = vld [vmem:[%s2242_s0 + $0x30] sm:$0xff] }
 0x34e   :  { %v674_v42 = vunpack.c.l.bf16 %v1166_v41 }
 0x34f   :  { %v2013_v46 = vadd.f32 %v554_v44, %v553_v43 }
 0x351   :  { %v556_v47 = vpack.c.bf16 %v2013_v46, %v2013_v46 }
 0x353   :  { %1160 = vst [vmem:[%s2244_s4 + $0x8] sm:$0xf] %v556_v47  ;;  %1283 = vmatprep.mubr.bf16.mxu0 %v556_v47  ;;  %1479 = vmatmul.mubr.bf16.vlgmr.msra.gmra.mrb[12].mxu1 %v556_v47 }
 0x354   :  { %1284 = vmatmul.mubr.bf16.vlgmr.msra.gmra.mrb[12].mxu0 %v556_v47  ;;  %1483 = vmatpush3.bf16.xpose.msra.mxu1 %v1733_v5  ;;  %v675_v47 = vunpack.c.h.bf16 %v1166_v41 }
 0x355   :  { %1295 = vmatpush3.bf16.xpose.msra.mxu0 %v1715_v2  ;;  %1484 = vmatprep.subr.bf16.mxu1 %v1677_v1 }
 0x356   :  { %1296 = vmatprep.subr.bf16.mxu0 %v1721_v3  ;;  %1498 = vmatprep.mubr.msk.bf16.mxu1 %vm1678_vm0, %v1677_v1 }
 0x35c   :  { %1485 = vmatpush3.bf16.xpose.msra.mxu1 %v1747_v7 }
 0x35d   :  { %1297 = vmatpush3.bf16.xpose.msra.mxu0 %v1728_v4  ;;  %1486 = vmatprep.subr.bf16.mxu1 %v1677_v1 }
 0x35e   :  { %1298 = vmatprep.subr.bf16.mxu0 %v1738_v6 }
 0x364   :  { %1487 = vmatpush3.bf16.xpose.msra.mxu1 %v1766_v10 }
 0x365   :  { %1299 = vmatpush3.bf16.xpose.msra.mxu0 %v1752_v8  ;;  %1488 = vmatprep.subr.bf16.mxu1 %v1677_v1 }
 0x366   :  { %1300 = vmatprep.subr.bf16.mxu0 %v1757_v9 }
 0x36c   :  { %1489 = vmatpush3.bf16.xpose.msra.mxu1 %v1792_v15 }
 0x36d   :  { %1301 = vmatpush3.bf16.xpose.msra.mxu0 %v1778_v13  ;;  %1490 = vmatprep.subr.bf16.mxu1 %v1677_v1 }
 0x36e   :  { %1302 = vmatprep.subr.bf16.mxu0 %v1783_v14 }
 0x374   :  { %1491 = vmatpush3.bf16.xpose.msra.mxu1 %v1811_v18 }
 0x375   :  { %1303 = vmatpush3.bf16.xpose.msra.mxu0 %v1797_v16  ;;  %1492 = vmatprep.subr.bf16.mxu1 %v1677_v1 }
 0x376   :  { %1304 = vmatprep.subr.bf16.mxu0 %v1802_v17 }
 0x37c   :  { %1493 = vmatpush3.bf16.xpose.msra.mxu1 %v1830_v21 }
 0x37d   :  { %1305 = vmatpush3.bf16.xpose.msra.mxu0 %v1816_v19  ;;  %1494 = vmatprep.subr.bf16.mxu1 %v1677_v1 }
 0x37e   :  { %1306 = vmatprep.subr.bf16.mxu0 %v1821_v20 }
 0x384   :  { %1495 = vmatpush3.bf16.xpose.msra.mxu1 %v1849_v24 }
 0x385   :  { %1307 = vmatpush3.bf16.xpose.msra.mxu0 %v1835_v22  ;;  %1496 = vmatprep.subr.bf16.mxu1 %v1677_v1 }
 0x386   :  { %1308 = vmatprep.subr.bf16.mxu0 %v1840_v23 }
 0x38c   :  { %1497 = vmatpush3.bf16.xpose.msra.mxu1 %v1863_v26 }
 0x38d   :  { %1309 = vmatpush3.bf16.xpose.msra.mxu0 %v1854_v25  ;;  %1502 = vmatprep.subr.bf16.mxu1 %v1677_v1 }
 0x38e   :  { %1321 = vmatprep.subr.bf16.mxu0 %v1707_v0 }
 0x426   :  { %v640_v49 = vpop.f32.mrb[12].mxu1 }
 0x427   :  { %v599_v50 = vpop.f32.mrb[12].mxu0  ;;  %v1480_v51 = vpop.f32.mrb[13].mxu1  ;;  %v660_v28 = vadd.f32 %v1907_v45, %v640_v49 }
 0x428   :  { %v646_v53 = vadd.f32 %v599_v50, %v562_v48  ;;  %v601_v54 = vpop.f32.mrb[13].mxu0  ;;  %v643_v55 = vpop.f32.mrb[14].mxu1 }
 0x429   :  { %v603_v56 = vpop.f32.mrb[14].mxu0  ;;  %v1481_v57 = vpop.f32.mrb[15].mxu1  ;;  %v653_v60 = vadd.f32 %v601_v54, %v563_v52 }
 0x42a   :  { %v1163_v58 = vmul.f32 -1.442695, %v646_v53  ;;  %v604_v59 = vpop.f32.mrb[15].mxu0 }
 0x42b   :  { %v1164_v61 = vmul.f32 -1.442695, %v653_v60  ;;  %v676_v60 = vunpack.c.h.bf16 %v2060_v12 }
 0x42c   :  { %1618 = vpow2.f32 %v1163_v58 }
 0x42d   :  { %1620 = vpow2.f32 %v1164_v61 }
 0x436   :  { %v1619_v62 = vpop.eup %1618 }
 0x437   :  { %v650_v63 = vadd.f32 1.0, %v1619_v62  ;;  %v1621_v11 = vpop.eup %1620 }
 0x438   :  { %v657_v27 = vadd.f32 1.0, %v1621_v11 }
 0x439   :  { %1622 = vrcp.f32 %v650_v63 }
 0x43a   :  { %1624 = vrcp.f32 %v657_v27 }
 0x443   :  { %v1623_v30 = vpop.eup %1622 }
 0x444   :  { %v661_v31 = vmul.f32 %v1623_v30, %v660_v28  ;;  %v1625_v33 = vpop.eup %1624 }
 0x445   :  { %v664_v34 = vsub.f32 1.0, %v1625_v33  ;;  %v666_v37 = vmul.f32 %v1625_v33, %v2013_v46 }
 0x446   :  { %v662_v32 = vadd.f32 %v661_v31, %v564_v29 }
 0x448   :  { %1626 = vtanh.f32 %v662_v32 }
 0x452   :  { %v1627_v35 = vpop.eup %1626 }
 0x453   :  { %v665_v36 = vmul.f32 %v1627_v35, %v664_v34 }
 0x455   :  { %v2065_v38 = vadd.f32 %v666_v37, %v665_v36 }
 0x457   :  { %v668_v40 = vpack.c.bf16 %v2065_v38, %v2065_v38 }
 0x459   :  { %1165 = vst [vmem:[%s2244_s4 + $0xc] sm:$0xf] %v668_v40  ;;  %1310 = vmatprep.mubr.bf16.mxu0 %v668_v40  ;;  %1499 = vmatmul.mubr.bf16.vlgmr.msra.gmra.mrb[16].mxu1 %v668_v40 }
 0x45a   :  { %1311 = vmatmul.mubr.bf16.vlgmr.msra.gmra.mrb[16].mxu0 %v668_v40  ;;  %1503 = vmatpush3.bf16.xpose.msra.mxu1 %v1733_v5 }
 0x45b   :  { %1322 = vmatpush3.bf16.xpose.msra.mxu0 %v1715_v2  ;;  %1504 = vmatprep.subr.bf16.mxu1 %v1677_v1 }
 0x45c   :  { %1323 = vmatprep.subr.bf16.mxu0 %v1721_v3  ;;  %1518 = vmatprep.mubr.msk.bf16.mxu1 %vm1678_vm0, %v1677_v1 }
 0x462   :  { %1505 = vmatpush3.bf16.xpose.msra.mxu1 %v1747_v7 }
 0x463   :  { %1324 = vmatpush3.bf16.xpose.msra.mxu0 %v1728_v4  ;;  %1506 = vmatprep.subr.bf16.mxu1 %v1677_v1 }
 0x464   :  { %1325 = vmatprep.subr.bf16.mxu0 %v1738_v6 }
 0x46a   :  { %1507 = vmatpush3.bf16.xpose.msra.mxu1 %v1766_v10 }
 0x46b   :  { %1326 = vmatpush3.bf16.xpose.msra.mxu0 %v1752_v8  ;;  %1508 = vmatprep.subr.bf16.mxu1 %v1677_v1 }
 0x46c   :  { %1327 = vmatprep.subr.bf16.mxu0 %v1757_v9 }
 0x472   :  { %1509 = vmatpush3.bf16.xpose.msra.mxu1 %v1792_v15 }
 0x473   :  { %1328 = vmatpush3.bf16.xpose.msra.mxu0 %v1778_v13  ;;  %1510 = vmatprep.subr.bf16.mxu1 %v1677_v1 }
 0x474   :  { %1329 = vmatprep.subr.bf16.mxu0 %v1783_v14 }
 0x47a   :  { %1511 = vmatpush3.bf16.xpose.msra.mxu1 %v1811_v18 }
 0x47b   :  { %1330 = vmatpush3.bf16.xpose.msra.mxu0 %v1797_v16  ;;  %1512 = vmatprep.subr.bf16.mxu1 %v1677_v1 }
 0x47c   :  { %1331 = vmatprep.subr.bf16.mxu0 %v1802_v17 }
 0x482   :  { %1513 = vmatpush3.bf16.xpose.msra.mxu1 %v1830_v21 }
 0x483   :  { %1332 = vmatpush3.bf16.xpose.msra.mxu0 %v1816_v19  ;;  %1514 = vmatprep.subr.bf16.mxu1 %v1677_v1 }
 0x484   :  { %1333 = vmatprep.subr.bf16.mxu0 %v1821_v20 }
 0x48a   :  { %1515 = vmatpush3.bf16.xpose.msra.mxu1 %v1849_v24 }
 0x48b   :  { %1334 = vmatpush3.bf16.xpose.msra.mxu0 %v1835_v22  ;;  %1516 = vmatprep.subr.bf16.mxu1 %v1677_v1 }
 0x48c   :  { %1335 = vmatprep.subr.bf16.mxu0 %v1840_v23 }
 0x492   :  { %1517 = vmatpush3.bf16.xpose.msra.mxu1 %v1863_v26 }
 0x493   :  { %1336 = vmatpush3.bf16.xpose.msra.mxu0 %v1854_v25  ;;  %1522 = vmatprep.subr.bf16.mxu1 %v1677_v1 }
 0x494   :  { %1348 = vmatprep.subr.bf16.mxu0 %v1707_v0 }
 0x52c   :  { %v752_v43 = vpop.f32.mrb[16].mxu1 }
 0x52d   :  { %v711_v44 = vpop.f32.mrb[16].mxu0  ;;  %v1500_v46 = vpop.f32.mrb[17].mxu1  ;;  %v772_v59 = vadd.f32 %v1907_v45, %v752_v43 }
 0x52e   :  { %v758_v39 = vadd.f32 %v711_v44, %v674_v42  ;;  %v713_v48 = vpop.f32.mrb[17].mxu0  ;;  %v755_v49 = vpop.f32.mrb[18].mxu1  ;;  %v2161_v44 = vld [vmem:[%s2242_s0 + $0x44] ss:$12 sps:$4 sm:$0xff]  }
 0x52f   :  { %v715_v50 = vpop.f32.mrb[18].mxu0  ;;  %v1501_v51 = vpop.f32.mrb[19].mxu1  ;;  %v765_v54 = vadd.f32 %v713_v48, %v675_v47 }
 0x530   :  { %v1168_v52 = vmul.f32 -1.442695, %v758_v39  ;;  %v716_v53 = vpop.f32.mrb[19].mxu0  ;;  %v788_v39 = vunpack.c.l.bf16 %v2161_v44 }
 0x531   :  { %v1169_v55 = vmul.f32 -1.442695, %v765_v54 }
 0x532   :  { %1628 = vpow2.f32 %v1168_v52 }
 0x533   :  { %1630 = vpow2.f32 %v1169_v55 }
 0x53c   :  { %v1629_v0 = vpop.eup %1628 }
 0x53d   :  { %v762_v56 = vadd.f32 1.0, %v1629_v0  ;;  %v1631_v57 = vpop.eup %1630 }
 0x53e   :  { %v769_v58 = vadd.f32 1.0, %v1631_v57  ;;  %v1669_v57 = vld [vmem:[%s2240_s2 + $0x80] sm:$0xff]  }
 0x53f   :  { %1632 = vrcp.f32 %v762_v56 }
 0x540   :  { %1634 = vrcp.f32 %v769_v58  ;;  %v1670_v58 = vld [vmem:[%s2240_s2] sm:$0xff]  }
 0x549   :  { %v1633_v61 = vpop.eup %1632 }
 0x54a   :  { %v773_v62 = vmul.f32 %v1633_v61, %v772_v59  ;;  %v1635_v11 = vpop.eup %1634  ;;  %v1671_v59 = vld [vmem:[%s2240_s2 + $0x48] sm:$0xff]  }
 0x54b   :  { %v776_v27 = vsub.f32 1.0, %v1635_v11  ;;  %v778_v30 = vmul.f32 %v1635_v11, %v2065_v38  ;;  %v1673_v61 = vld [vmem:[%s2240_s2 + $0x8] sm:$0xff]   ;;  %v1676_v11 = vld [vmem:[%s2240_s2 + $0x58] sm:$0xff]  }
 0x54c   :  { %v774_v63 = vadd.f32 %v773_v62, %v676_v60  ;;  %v1672_v60 = vld [vmem:[%s2240_s2 + $0x88] sm:$0xff]   ;;  %v1674_v62 = vld [vmem:[%s2240_s2 + $0x50] sm:$0xff]  }
 0x54e   :  { %1636 = vtanh.f32 %v774_v63  ;;  %v1675_v63 = vld [vmem:[%s2240_s2 + $0x10] sm:$0xff]  }
 0x558   :  { %v1637_v28 = vpop.eup %1636 }
 0x559   :  { %v777_v29 = vmul.f32 %v1637_v28, %v776_v27 }
 0x55b   :  { %v2112_v31 = vadd.f32 %v778_v30, %v777_v29 }
 0x55d   :  { %v780_v32 = vpack.c.bf16 %v2112_v31, %v2112_v31 }
 0x55f   :  { %1170 = vst [vmem:[%s2244_s4 + $0x10] sm:$0xf] %v780_v32  ;;  %1337 = vmatprep.mubr.bf16.mxu0 %v780_v32  ;;  %1519 = vmatmul.mubr.bf16.vlgmr.msra.gmra.mrb[20].mxu1 %v780_v32 }
 0x560   :  { %1338 = vmatmul.mubr.bf16.vlgmr.msra.gmra.mrb[20].mxu0 %v780_v32  ;;  %1523 = vmatpush3.bf16.xpose.msra.mxu1 %v1733_v5 }
 0x561   :  { %1349 = vmatpush3.bf16.xpose.msra.mxu0 %v1715_v2  ;;  %1524 = vmatprep.subr.bf16.mxu1 %v1677_v1  ;;  %v1668_v2 = vld [vmem:[%s2240_s2 + $0x40] sm:$0xff]  }
 0x562   :  { %1350 = vmatprep.subr.bf16.mxu0 %v1721_v3  ;;  %1538 = vmatprep.mubr.msk.bf16.mxu1 %vm1678_vm0, %v1677_v1  ;;  %v1171_v3 = vld [vmem:[%s2242_s0 + $0x3c] sm:$0xff] }
 0x568   :  { %1525 = vmatpush3.bf16.xpose.msra.mxu1 %v1747_v7 }
 0x569   :  { %1351 = vmatpush3.bf16.xpose.msra.mxu0 %v1728_v4  ;;  %1526 = vmatprep.subr.bf16.mxu1 %v1677_v1  ;;  %v786_v4 = vunpack.c.l.bf16 %v1171_v3 }
 0x56a   :  { %1352 = vmatprep.subr.bf16.mxu0 %v1738_v6 }
 0x570   :  { %1527 = vmatpush3.bf16.xpose.msra.mxu1 %v1766_v10 }
 0x571   :  { %1353 = vmatpush3.bf16.xpose.msra.mxu0 %v1752_v8  ;;  %1528 = vmatprep.subr.bf16.mxu1 %v1677_v1  ;;  %v787_v8 = vunpack.c.h.bf16 %v1171_v3 }
 0x572   :  { %1354 = vmatprep.subr.bf16.mxu0 %v1757_v9 }
 0x578   :  { %1529 = vmatpush3.bf16.xpose.msra.mxu1 %v1792_v15 }
 0x579   :  { %1355 = vmatpush3.bf16.xpose.msra.mxu0 %v1778_v13  ;;  %1530 = vmatprep.subr.bf16.mxu1 %v1677_v1 }
 0x57a   :  { %1356 = vmatprep.subr.bf16.mxu0 %v1783_v14 }
 0x580   :  { %1531 = vmatpush3.bf16.xpose.msra.mxu1 %v1811_v18 }
 0x581   :  { %1357 = vmatpush3.bf16.xpose.msra.mxu0 %v1797_v16  ;;  %1532 = vmatprep.subr.bf16.mxu1 %v1677_v1 }
 0x582   :  { %1358 = vmatprep.subr.bf16.mxu0 %v1802_v17 }
 0x588   :  { %1533 = vmatpush3.bf16.xpose.msra.mxu1 %v1830_v21 }
 0x589   :  { %1359 = vmatpush3.bf16.xpose.msra.mxu0 %v1816_v19  ;;  %1534 = vmatprep.subr.bf16.mxu1 %v1677_v1 }
 0x58a   :  { %1360 = vmatprep.subr.bf16.mxu0 %v1821_v20 }
 0x590   :  { %1535 = vmatpush3.bf16.xpose.msra.mxu1 %v1849_v24 }
 0x591   :  { %1361 = vmatpush3.bf16.xpose.msra.mxu0 %v1835_v22  ;;  %1536 = vmatprep.subr.bf16.mxu1 %v1677_v1 }
 0x592   :  { %1362 = vmatprep.subr.bf16.mxu0 %v1840_v23 }
 0x598   :  { %1537 = vmatpush3.bf16.xpose.msra.mxu1 %v1863_v26 }
 0x599   :  { %1363 = vmatpush3.bf16.xpose.msra.mxu0 %v1854_v25  ;;  %1542 = vmatprep.subr.bf16.mxu1 %v1677_v1 }
 0x59a   :  { %1375 = vmatprep.subr.bf16.mxu0 %v1668_v2 }
 0x632   :  { %v864_v5 = vpop.f32.mrb[20].mxu1 }
 0x633   :  { %v823_v6 = vpop.f32.mrb[20].mxu0  ;;  %v1520_v7 = vpop.f32.mrb[21].mxu1  ;;  %v884_v47 = vadd.f32 %v1907_v45, %v864_v5 }
 0x634   :  { %v870_v9 = vadd.f32 %v823_v6, %v786_v4  ;;  %v825_v12 = vpop.f32.mrb[21].mxu0  ;;  %v867_v33 = vpop.f32.mrb[22].mxu1 }
 0x635   :  { %v827_v34 = vpop.f32.mrb[22].mxu0  ;;  %v1521_v35 = vpop.f32.mrb[23].mxu1  ;;  %v877_v38 = vadd.f32 %v825_v12, %v787_v8  ;;  %v1181_v33 = vld [vmem:[%s2242_s0 + $0x54] sm:$0xff] }
 0x636   :  { %v1173_v36 = vmul.f32 -1.442695, %v870_v9  ;;  %v828_v37 = vpop.f32.mrb[23].mxu0  ;;  %v1010_v34 = vunpack.c.l.bf16 %v1181_v33 }
 0x637   :  { %v1174_v40 = vmul.f32 -1.442695, %v877_v38  ;;  %v1011_v38 = vunpack.c.h.bf16 %v1181_v33 }
 0x638   :  { %1638 = vpow2.f32 %v1173_v36 }
 0x639   :  { %1640 = vpow2.f32 %v1174_v40 }
 0x642   :  { %v1639_v41 = vpop.eup %1638 }
 0x643   :  { %v874_v42 = vadd.f32 1.0, %v1639_v41  ;;  %v1641_v43 = vpop.eup %1640 }
 0x644   :  { %v881_v46 = vadd.f32 1.0, %v1641_v43 }
 0x645   :  { %1642 = vrcp.f32 %v874_v42 }
 0x646   :  { %1644 = vrcp.f32 %v881_v46 }
 0x64f   :  { %v1643_v48 = vpop.eup %1642 }
 0x650   :  { %v885_v49 = vmul.f32 %v1643_v48, %v884_v47  ;;  %v1645_v51 = vpop.eup %1644 }
 0x651   :  { %v888_v52 = vsub.f32 1.0, %v1645_v51  ;;  %v890_v55 = vmul.f32 %v1645_v51, %v2112_v31  ;;  %v900_v31 = vunpack.c.h.bf16 %v2161_v44 }
 0x652   :  { %v886_v50 = vadd.f32 %v885_v49, %v788_v39 }
 0x654   :  { %1646 = vtanh.f32 %v886_v50 }
 0x65e   :  { %v1647_v53 = vpop.eup %1646 }
 0x65f   :  { %v889_v54 = vmul.f32 %v1647_v53, %v888_v52  ;;  %v1182_v52 = vld [vmem:[%s2242_s0 + $0x5c] sm:$0xf] }
 0x661   :  { %v2166_v0 = vadd.f32 %v890_v55, %v889_v54  ;;  %v1012_v55 = vunpack.c.l.bf16 %v1182_v52 }
 0x663   :  { %v892_v56 = vpack.c.bf16 %v2166_v0, %v2166_v0 }
 0x665   :  { %1175 = vst [vmem:[%s2244_s4 + $0x14] sm:$0xf] %v892_v56  ;;  %1364 = vmatprep.mubr.bf16.mxu0 %v892_v56  ;;  %1539 = vmatmul.mubr.bf16.vlgmr.msra.gmra.mrb[24].mxu1 %v892_v56 }
 0x666   :  { %1365 = vmatmul.mubr.bf16.vlgmr.msra.gmra.mrb[24].mxu0 %v892_v56  ;;  %1543 = vmatpush3.bf16.xpose.msra.mxu1 %v1669_v57 }
 0x667   :  { %1376 = vmatpush3.bf16.xpose.msra.mxu0 %v1670_v58  ;;  %1544 = vmatprep.subr.bf16.mxu1 %v1677_v1 }
 0x668   :  { %1377 = vmatprep.subr.bf16.mxu0 %v1671_v59  ;;  %1558 = vmatprep.mubr.msk.bf16.mxu1 %vm1678_vm0, %v1677_v1 }
 0x66e   :  { %1545 = vmatpush3.bf16.xpose.msra.mxu1 %v1672_v60 }
 0x66f   :  { %1378 = vmatpush3.bf16.xpose.msra.mxu0 %v1673_v61  ;;  %1546 = vmatprep.subr.bf16.mxu1 %v1677_v1 }
 0x670   :  { %1379 = vmatprep.subr.bf16.mxu0 %v1674_v62 }
 0x676   :  { %1547 = vmatpush3.bf16.xpose.msra.mxu1 %v1766_v10  ;;  %v1176_v10 = vld [vmem:[%s2242_s0 + $0x48] sm:$0xff] }
 0x677   :  { %1380 = vmatpush3.bf16.xpose.msra.mxu0 %v1675_v63  ;;  %1548 = vmatprep.subr.bf16.mxu1 %v1677_v1 }
 0x678   :  { %1381 = vmatprep.subr.bf16.mxu0 %v1676_v11 }
 0x67e   :  { %1549 = vmatpush3.bf16.xpose.msra.mxu1 %v1792_v15 }
 0x67f   :  { %1382 = vmatpush3.bf16.xpose.msra.mxu0 %v1778_v13  ;;  %1550 = vmatprep.subr.bf16.mxu1 %v1677_v1  ;;  %v898_v13 = vunpack.c.l.bf16 %v1176_v10 }
 0x680   :  { %1383 = vmatprep.subr.bf16.mxu0 %v1783_v14 }
 0x686   :  { %1551 = vmatpush3.bf16.xpose.msra.mxu1 %v1811_v18 }
 0x687   :  { %1384 = vmatpush3.bf16.xpose.msra.mxu0 %v1797_v16  ;;  %1552 = vmatprep.subr.bf16.mxu1 %v1677_v1 }
 0x688   :  { %1385 = vmatprep.subr.bf16.mxu0 %v1802_v17  ;;  %v899_v17 = vunpack.c.h.bf16 %v1176_v10 }
 0x68e   :  { %1553 = vmatpush3.bf16.xpose.msra.mxu1 %v1830_v21 }
 0x68f   :  { %1386 = vmatpush3.bf16.xpose.msra.mxu0 %v1816_v19  ;;  %1554 = vmatprep.subr.bf16.mxu1 %v1677_v1 }
 0x690   :  { %1387 = vmatprep.subr.bf16.mxu0 %v1821_v20 }
 0x696   :  { %1555 = vmatpush3.bf16.xpose.msra.mxu1 %v1849_v24 }
 0x697   :  { %1388 = vmatpush3.bf16.xpose.msra.mxu0 %v1835_v22  ;;  %1556 = vmatprep.subr.bf16.mxu1 %v1677_v1 }
 0x698   :  { %1389 = vmatprep.subr.bf16.mxu0 %v1840_v23 }
 0x69e   :  { %1557 = vmatpush3.bf16.xpose.msra.mxu1 %v1863_v26 }
 0x69f   :  { %1390 = vmatpush3.bf16.xpose.msra.mxu0 %v1854_v25 }
 0x738   :  { %v976_v14 = vpop.f32.mrb[24].mxu1 }
 0x739   :  { %v935_v15 = vpop.f32.mrb[24].mxu0  ;;  %v1540_v16 = vpop.f32.mrb[25].mxu1  ;;  %v996_v30 = vadd.f32 %v1907_v45, %v976_v14 }
 0x73a   :  { %v982_v18 = vadd.f32 %v935_v15, %v898_v13  ;;  %v937_v19 = vpop.f32.mrb[25].mxu0  ;;  %v979_v20 = vpop.f32.mrb[26].mxu1 }
 0x73b   :  { %v939_v21 = vpop.f32.mrb[26].mxu0  ;;  %v1541_v1 = vpop.f32.mrb[27].mxu1  ;;  %v989_v24 = vadd.f32 %v937_v19, %v899_v17 }
 0x73c   :  { %v1178_v22 = vmul.f32 -1.442695, %v982_v18  ;;  %v940_v23 = vpop.f32.mrb[27].mxu0 }
 0x73d   :  { %v1179_v26 = vmul.f32 -1.442695, %v989_v24 }
 0x73e   :  { %1648 = vpow2.f32 %v1178_v22 }
 0x73f   :  { %1650 = vpow2.f32 %v1179_v26 }
 0x748   :  { %v1649_v25 = vpop.eup %1648 }
 0x749   :  { %v986_v27 = vadd.f32 1.0, %v1649_v25  ;;  %v1651_v28 = vpop.eup %1650 }
 0x74a   :  { %v993_v29 = vadd.f32 1.0, %v1651_v28 }
 0x74b   :  { %1652 = vrcp.f32 %v986_v27 }
 0x74c   :  { %1654 = vrcp.f32 %v993_v29 }
 0x755   :  { %v1653_v32 = vpop.eup %1652 }
 0x756   :  { %v997_v2 = vmul.f32 %v1653_v32, %v996_v30  ;;  %v1655_v4 = vpop.eup %1654 }
 0x757   :  { %v1000_v5 = vsub.f32 1.0, %v1655_v4  ;;  %v1002_v8 = vmul.f32 %v1655_v4, %v2166_v0 }
 0x758   :  { %v998_v3 = vadd.f32 %v997_v2, %v900_v31 }
 0x75a   :  { %1656 = vtanh.f32 %v998_v3 }
 0x764   :  { %v1657_v6 = vpop.eup %1656 }
 0x765   :  { %v1001_v7 = vmul.f32 %v1657_v6, %v1000_v5 }
 0x767   :  { %v1003_v9 = vadd.f32 %v1002_v8, %v1001_v7 }
 0x769   :  { %v1004_v12 = vpack.c.bf16 %v1003_v9, %v1003_v9 }
 0x76b   :  { %1180 = vst [vmem:[%s2244_s4 + $0x18] sm:$0xf] %v1004_v12  ;;  %1391 = vmatprep.mubr.bf16.mxu0 %v1004_v12  ;;  %1559 = vmatmul.mubr.bf16.vlgmr.msra.gmra.mrb[28].mxu1 %v1004_v12 }
 0x76c   :  { %1392 = vmatmul.mubr.bf16.vlgmr.msra.gmra.mrb[28].mxu0 %v1004_v12 }
 0x83e   :  { %v1088_v35 = vpop.f32.mrb[28].mxu1 }
 0x83f   :  { %v1047_v36 = vpop.f32.mrb[28].mxu0  ;;  %v1560_v37 = vpop.f32.mrb[29].mxu1  ;;  %v1108_v54 = vadd.f32 %v1907_v45, %v1088_v35 }
 0x840   :  { %v1094_v40 = vadd.f32 %v1047_v36, %v1010_v34  ;;  %v1049_v41 = vpop.f32.mrb[29].mxu0  ;;  %v1091_v42 = vpop.f32.mrb[30].mxu1 }
 0x841   :  { %v1051_v43 = vpop.f32.mrb[30].mxu0  ;;  %v1561_v44 = vpop.f32.mrb[31].mxu1  ;;  %v1101_v39 = vadd.f32 %v1049_v41, %v1011_v38 }
 0x842   :  { %v1183_v46 = vmul.f32 -1.442695, %v1094_v40  ;;  %v1052_v47 = vpop.f32.mrb[31].mxu0 }
 0x843   :  { %v1184_v48 = vmul.f32 -1.442695, %v1101_v39 }
 0x844   :  { %1658 = vpow2.f32 %v1183_v46 }
 0x845   :  { %1660 = vpow2.f32 %v1184_v48 }
 0x84e   :  { %v1659_v49 = vpop.eup %1658 }
 0x84f   :  { %v1098_v50 = vadd.f32 1.0, %v1659_v49  ;;  %v1661_v51 = vpop.eup %1660 }
 0x850   :  { %v1105_v53 = vadd.f32 1.0, %v1661_v51 }
 0x851   :  { %1662 = vrcp.f32 %v1098_v50 }
 0x852   :  { %1664 = vrcp.f32 %v1105_v53 }
 0x85b   :  { %v1663_v0 = vpop.eup %1662 }
 0x85c   :  { %v1109_v56 = vmul.f32 %v1663_v0, %v1108_v54  ;;  %v1665_v58 = vpop.eup %1664 }
 0x85d   :  { %v1112_v59 = vsub.f32 1.0, %v1665_v58  ;;  %v1114_v62 = vmul.f32 %v1665_v58, %v1003_v9 }
 0x85e   :  { %v1110_v57 = vadd.f32 %v1109_v56, %v1012_v55 }
 0x860   :  { %1666 = vtanh.f32 %v1110_v57 }
 0x86a   :  { %v1667_v60 = vpop.eup %1666 }
 0x86b   :  { %v1113_v61 = vmul.f32 %v1667_v60, %v1112_v59 }
 0x86d   :  { %v1115_v63 = vadd.f32 %v1114_v62, %v1113_v61 }
 0x86f   :  { %v1116_v11 = vpack.c.bf16 %v1115_v63, %v1115_v63 }
 0x871   :  { %1185 = vst [vmem:[%s2244_s4 + $0x1c] sm:$0xf] %v1116_v11 }

</bundles_post_ra>
